<compile_context>
chip_gen: v5e
topology: v5e:2x2
jax: 0.10.0
libtpu: 0.0.40
codegen_flags: <defaults>
</compile_context>

<pallas_src>
import functools
from typing import NamedTuple, Optional

import jax
import jax.numpy as jnp
from jax.experimental import pallas as pl
from jax.experimental.pallas import tpu as pltpu


def _round_up(n, m):
    return ((n + m - 1) // m) * m


def _chip_defaults():
    """Per-generation tile / VMEM defaults."""
    kind = ""
    try:
        kind = jax.devices()[0].device_kind.lower()
    except Exception:
        pass
    if "v7" in kind:
        # 64 MiB VMEM per TC; 2 TCs share the megacore grid.
        return dict(tm=512, ti=256, vmem_cap=64 << 20, n_cores=2)
    if "v5 lite" in kind or "v5e" in kind or "v5litepod" in kind:
        # ~240 FLOP/byte crossover: tm=256 is already roughly compute-bound.
        return dict(tm=256, ti=512, vmem_cap=128 << 20, n_cores=1)
    # v6e (and default): ~570 FLOP/byte crossover -> larger token tiles.
    return dict(tm=512, ti=512, vmem_cap=128 << 20, n_cores=1)


class FFNGLUWeights(NamedTuple):
    """Pre-packed / pre-cast / pre-padded GLU FFN weights (built once)."""
    w1_packed: jax.Array     # [D, 2*I_pad]: per ti-chunk, [gate(ti) | up(ti)]
    w2_padded: jax.Array     # [I_pad, D]
    intermediate_dim: int    # original I
    ti: int                  # intermediate-dim tile used for packing


def prepare_ffn_glu_weights(w1, w2, *, ti: Optional[int] = None,
                            compute_dtype=jnp.bfloat16) -> FFNGLUWeights:
    """One-time weight prep (do this at model init, not per call).

    w1: [D, 2*I]  (torch proj_1.weight.T; first I cols = gate, last I = up)
    w2: [I, D]    (torch proj_2.weight.T)
    """
    D, two_I = w1.shape
    I = two_I // 2
    assert two_I == 2 * I
    assert w2.shape == (I, D)

    if ti is None:
        ti = _chip_defaults()["ti"]
    ti = min(ti, _round_up(I, 128))
    I_pad = _round_up(I, ti)

    w1g = w1[:, :I].astype(compute_dtype)
    w1u = w1[:, I:].astype(compute_dtype)
    w2c = w2.astype(compute_dtype)
    if I_pad != I:
        # Zero-padding the intermediate dim is exact: silu(0) * 0 == 0 and
        # the matching zero rows of w2 contribute nothing.
        pad = I_pad - I
        w1g = jnp.pad(w1g, ((0, 0), (0, pad)))
        w1u = jnp.pad(w1u, ((0, 0), (0, pad)))
        w2c = jnp.pad(w2c, ((0, pad), (0, 0)))

    nk = I_pad // ti
    # Interleave gate/up per ti-chunk so each k step is one DMA stream and a
    # single MXU pass over the x tile: columns [2k*ti, 2k*ti+ti) are the gate
    # chunk k, columns [2k*ti+ti, 2(k+1)*ti) are the up chunk k.
    w1p = jnp.stack(
        [w1g.reshape(D, nk, ti), w1u.reshape(D, nk, ti)], axis=2
    ).reshape(D, 2 * I_pad)

    return FFNGLUWeights(w1p, w2c, I, ti)


def _ffn_glu_kernel(x_ref, w1_ref, w2_ref, o_ref, acc_ref, *, ti, precision):
    # x_ref:   (tm, D)     token tile (resident across the k axis)
    # w1_ref:  (D, 2*ti)   packed proj_1 gate|up columns for this I-chunk
    # w2_ref:  (ti, D)     proj_2 rows for this I-chunk
    # o_ref:   (tm, D)     output tile (written on last I-chunk)
    # acc_ref: (tm, D)     f32 accumulator scratch
    k = pl.program_id(1)

    @pl.when(k == 0)
    def _init():
        acc_ref[...] = jnp.zeros_like(acc_ref)

    x = x_ref[...]
    # Fused proj_1 (gate + up in one MXU pass), f32 accumulation.
    y12 = jnp.dot(x, w1_ref[...], preferred_element_type=jnp.float32,
                  precision=precision)
    y1 = y12[:, :ti]
    y2 = y12[:, ti:]

    # SiLU gate in f32 on VPU/EUP.
    gated = (y1 * jax.nn.sigmoid(y1)) * y2

    # proj_2 partial product for this I-chunk, accumulated in f32.
    acc_ref[...] += jnp.dot(gated.astype(w2_ref.dtype), w2_ref[...],
                            preferred_element_type=jnp.float32,
                            precision=precision)

    @pl.when(k == pl.num_programs(1) - 1)
    def _finalize():
        o_ref[...] = acc_ref[...].astype(o_ref.dtype)


def ffn_glu_pallas_packed(x, weights: FFNGLUWeights, *, tm: Optional[int] = None,
                          out_dtype=None, precision=None):
    """GLU FFN forward using pre-packed weights (hot path for inference)."""
    B, S, D = x.shape
    w1p, w2p, I, ti = weights
    I_pad, D2 = w2p.shape
    assert D2 == D and w1p.shape == (D, 2 * I_pad) and I_pad % ti == 0

    cfg = _chip_defaults()
    if tm is None:
        tm = cfg["tm"]
    out_dtype = x.dtype if out_dtype is None else out_dtype
    compute_dtype = w1p.dtype

    M = B * S
    tm = min(tm, _round_up(M, 128))
    if cfg["n_cores"] >= 2 and M > 128:
        # Ensure at least 2 m-tiles so both v7x TensorCores get work.
        tm = min(tm, max(128, _round_up((M + 1) // 2, 128)))
    M_pad = _round_up(M, tm)

    x2d = x.reshape(M, D).astype(compute_dtype)
    if M_pad != M:
        x2d = jnp.pad(x2d, ((0, M_pad - M), (0, 0)))

    grid = (M_pad // tm, I_pad // ti)

    # Rough per-step VMEM budget (double-buffered tiles + f32 intermediates),
    # clamped to the per-generation physical VMEM capacity minus headroom.
    eb = jnp.dtype(compute_dtype).itemsize
    ob = jnp.dtype(out_dtype).itemsize
    est = (2 * tm * D * eb            # x tile (2 buffers)
           + 2 * 2 * ti * D * eb      # packed W1 tile (2 buffers)
           + 2 * ti * D * eb          # W2 tile (2 buffers)
           + 2 * tm * D * ob          # output tile (2 buffers)
           + tm * D * 4               # f32 accumulator scratch
           + 4 * tm * ti * 4)         # y12 / y1 / y2 / gated f32 values
    vmem_limit = int(min(max(int(est * 1.3), 32 << 20),
                         cfg["vmem_cap"] - (8 << 20)))

    n_m_tiles = M_pad // tm
    cost = pl.CostEstimate(
        flops=int(6 * M * D * I),
        transcendentals=int(M * I),
        bytes_accessed=int(M * D * (eb + ob) + n_m_tiles * 3 * D * I_pad * eb),
    )

    kernel = functools.partial(_ffn_glu_kernel, ti=ti, precision=precision)

    out2d = pl.pallas_call(
        kernel,
        out_shape=jax.ShapeDtypeStruct((M_pad, D), out_dtype),
        grid_spec=pltpu.PrefetchScalarGridSpec(
            num_scalar_prefetch=0,
            grid=grid,                                          # (m, k), k last
            in_specs=[
                pl.BlockSpec((tm, D), lambda i, k: (i, 0)),      # token tile
                pl.BlockSpec((D, 2 * ti), lambda i, k: (0, k)),  # packed W1 chunk
                pl.BlockSpec((ti, D), lambda i, k: (k, 0)),      # W2 chunk
            ],
            out_specs=pl.BlockSpec((tm, D), lambda i, k: (i, 0)),
            scratch_shapes=[pltpu.VMEM((tm, D), jnp.float32)],
        ),
        compiler_params=pltpu.CompilerParams(
            dimension_semantics=("parallel", "arbitrary"),
            vmem_limit_bytes=vmem_limit,
        ),
        cost_estimate=cost,
    )(x2d, w1p, w2p)

    return out2d[:M].reshape(B, S, D)


def ffn_glu_pallas(x, w1, w2, *, tm=None, ti=None,
                   compute_dtype=jnp.bfloat16, precision=None):
    """Convenience one-shot wrapper: packs weights then runs the kernel.

    For repeated calls (inference), call prepare_ffn_glu_weights() once and
    use ffn_glu_pallas_packed() directly.
    """
    weights = prepare_ffn_glu_weights(w1, w2, ti=ti, compute_dtype=compute_dtype)
    return ffn_glu_pallas_packed(x, weights, tm=tm, precision=precision)


def ffn_glu_ref(x, w1, w2):
    """Pure-JAX reference mirroring the PyTorch forward."""
    y12 = jnp.einsum("bsd,df->bsf", x, w1)
    I = w2.shape[0]
    y1, y2 = y12[..., :I], y12[..., I:]
    y = (y1 * jax.nn.sigmoid(y1)) * y2
    return jnp.einsum("bsi,id->bsd", y, w2)


if __name__ == "__main__":
    # Small, consistent shapes:
    #   model_dim D = 128, ffn_dim_divisor = 256 -> intermediate_dim I = 256
    B, S, D, I = 2, 8, 128, 256

    key = jax.random.PRNGKey(0)
    kx, k1, k2 = jax.random.split(key, 3)

    x = jax.random.normal(kx, (B, S, D), dtype=jnp.float32)
    # torch Linear weight is [out, in]; we store the transpose for row-major
    # matmuls in the kernel.
    w1 = (jax.random.normal(k1, (D, 2 * I), dtype=jnp.float32)
          * (1.0 / jnp.sqrt(D)))
    w2 = (jax.random.normal(k2, (I, D), dtype=jnp.float32)
          * (1.0 / jnp.sqrt(I)))

    ref = ffn_glu_ref(x, w1, w2)

    # Default bf16-operand / f32-accumulation path — loose check.
    out_bf16 = jax.block_until_ready(ffn_glu_pallas(x, w1, w2))
    assert out_bf16.shape == (B, S, D)
    assert jnp.allclose(out_bf16, ref, atol=1e-1, rtol=1e-1), \
        "bf16 mismatch vs reference"

    # f32-operand path — tight check.
    out_f32 = jax.block_until_ready(
        ffn_glu_pallas(x, w1, w2, compute_dtype=jnp.float32))
    assert out_f32.shape == (B, S, D)
    assert jnp.allclose(out_f32, ref, atol=1e-4, rtol=1e-4), \
        "f32 mismatch vs reference"

    # Hoisted / pre-packed weight path (what a model would do at init).
    packed = prepare_ffn_glu_weights(w1, w2, compute_dtype=jnp.float32)
    out_packed = jax.block_until_ready(ffn_glu_pallas_packed(x, packed))
    assert out_packed.shape == (B, S, D)
    assert jnp.allclose(out_packed, ref, atol=1e-4, rtol=1e-4), \
        "packed-weight mismatch vs reference"

    print("KERNEL_OK")
</pallas_src>

<mosaic_0001>
module attributes {stable_mosaic.version = 11 : i64} {
  func.func @_ffn_glu_kernel(%arg0: i32, %arg1: i32, %arg2: memref<128x128xbf16, #tpu.memory_space<vmem>>, %arg3: memref<128x512xbf16, #tpu.memory_space<vmem>>, %arg4: memref<256x128xbf16, #tpu.memory_space<vmem>>, %arg5: memref<128x128xf32, #tpu.memory_space<vmem>>, %arg6: memref<128x128xf32, #tpu.memory_space<vmem>>) attributes {dimension_semantics = [#tpu.dimension_semantics<parallel>, #tpu.dimension_semantics<arbitrary>], iteration_bounds = array<i64: 1, 1>, scalar_prefetch = 0 : i64, scratch_operands = 1 : i64, tpu.core_type = #tpu.core_type<tc>, window_params = [{transform_indices = @transform_0, window_bounds = array<i64: 128, 128>}, {transform_indices = @transform_1, window_bounds = array<i64: 128, 512>}, {transform_indices = @transform_2, window_bounds = array<i64: 256, 128>}, {transform_indices = @transform_3, window_bounds = array<i64: 128, 128>}]} {
    %c0_i32 = arith.constant 0 : i32
    %0 = arith.cmpi eq, %arg1, %c0_i32 : i32
    %1 = arith.extui %0 : i1 to i32
    %c0_i32_0 = arith.constant 0 : i32
    %2 = arith.cmpi ne, %1, %c0_i32_0 : i32
    scf.if %2 {
      %cst_14 = arith.constant 0.000000e+00 : f32
      %24 = vector.broadcast %cst_14 : f32 to vector<128x128xf32>
      %c0_15 = arith.constant 0 : index
      %c0_16 = arith.constant 0 : index
      %25 = vector.load %arg6[%c0_15, %c0_16] : memref<128x128xf32, #tpu.memory_space<vmem>>, vector<128x128xf32>
      tpu.vector_store %arg6[%c0_15, %c0_16], %24 {strides = array<i32>} : memref<128x128xf32, #tpu.memory_space<vmem>>, vector<128x128xf32>,
    } else {
    }
    %c0 = arith.constant 0 : index
    %c0_1 = arith.constant 0 : index
    %3 = vector.load %arg2[%c0, %c0_1] : memref<128x128xbf16, #tpu.memory_space<vmem>>, vector<128x128xbf16>
    %c0_2 = arith.constant 0 : index
    %c0_3 = arith.constant 0 : index
    %4 = vector.load %arg3[%c0_2, %c0_3] : memref<128x512xbf16, #tpu.memory_space<vmem>>, vector<128x512xbf16>
    %cst = arith.constant dense<0.000000e+00> : vector<128x512xf32>
    %5 = tpu.matmul %3, %4, %cst {dimension_numbers = #tpu.dot_dimension_numbers<[1], [0], [0], [1], [0, 0, 1, 1], [], []>} : vector<128x128xbf16>, vector<128x512xbf16>, vector<128x512xf32> -> vector<128x512xf32>
    %6 = vector.extract_strided_slice %5 {offsets = [0, 0], sizes = [128, 256], strides = [1, 1]} : vector<128x512xf32> to vector<128x256xf32>
    %7 = vector.extract_strided_slice %5 {offsets = [0, 256], sizes = [128, 256], strides = [1, 1]} : vector<128x512xf32> to vector<128x256xf32>
    %8 = arith.negf %6 : vector<128x256xf32>
    %9 = math.exp %8 : vector<128x256xf32>
    %cst_4 = arith.constant 1.000000e+00 : f32
    %10 = vector.broadcast %cst_4 : f32 to vector<128x256xf32>
    %11 = arith.addf %10, %9 : vector<128x256xf32>
    %12 = arith.divf %10, %11 : vector<128x256xf32>
    %13 = arith.mulf %6, %12 : vector<128x256xf32>
    %14 = arith.mulf %13, %7 : vector<128x256xf32>
    %c0_5 = arith.constant 0 : index
    %c0_6 = arith.constant 0 : index
    %15 = vector.load %arg6[%c0_5, %c0_6] : memref<128x128xf32, #tpu.memory_space<vmem>>, vector<128x128xf32>
    %16 = arith.truncf %14 : vector<128x256xf32> to vector<128x256xbf16>
    %c0_7 = arith.constant 0 : index
    %c0_8 = arith.constant 0 : index
    %17 = vector.load %arg4[%c0_7, %c0_8] : memref<256x128xbf16, #tpu.memory_space<vmem>>, vector<256x128xbf16>
    %cst_9 = arith.constant dense<0.000000e+00> : vector<128x128xf32>
    %18 = tpu.matmul %16, %17, %cst_9 {dimension_numbers = #tpu.dot_dimension_numbers<[1], [0], [0], [1], [0, 0, 1, 1], [], []>} : vector<128x256xbf16>, vector<256x128xbf16>, vector<128x128xf32> -> vector<128x128xf32>
    %19 = arith.addf %15, %18 : vector<128x128xf32>
    %c0_10 = arith.constant 0 : index
    %c0_11 = arith.constant 0 : index
    %20 = vector.load %arg6[%c0_10, %c0_11] : memref<128x128xf32, #tpu.memory_space<vmem>>, vector<128x128xf32>
    tpu.vector_store %arg6[%c0_10, %c0_11], %19 {strides = array<i32>} : memref<128x128xf32, #tpu.memory_space<vmem>>, vector<128x128xf32>,
    %c0_i32_12 = arith.constant 0 : i32
    %21 = arith.cmpi eq, %arg1, %c0_i32_12 : i32
    %22 = arith.extui %21 : i1 to i32
    %c0_i32_13 = arith.constant 0 : i32
    %23 = arith.cmpi ne, %22, %c0_i32_13 : i32
    scf.if %23 {
      %c0_14 = arith.constant 0 : index
      %c0_15 = arith.constant 0 : index
      %24 = vector.load %arg6[%c0_14, %c0_15] : memref<128x128xf32, #tpu.memory_space<vmem>>, vector<128x128xf32>
      %c0_16 = arith.constant 0 : index
      %c0_17 = arith.constant 0 : index
      %25 = vector.load %arg5[%c0_16, %c0_17] : memref<128x128xf32, #tpu.memory_space<vmem>>, vector<128x128xf32>
      tpu.vector_store %arg5[%c0_16, %c0_17], %24 {strides = array<i32>} : memref<128x128xf32, #tpu.memory_space<vmem>>, vector<128x128xf32>,
    } else {
    }
    return
  }
  func.func @transform_0(%arg0: i32, %arg1: i32) -> (i32, i32) {
    %c0_i32 = arith.constant 0 : i32
    %c0_i32_0 = arith.constant 0 : i32
    return %arg0, %c0_i32 : i32, i32
  }
  func.func @transform_1(%arg0: i32, %arg1: i32) -> (i32, i32) {
    %c0_i32 = arith.constant 0 : i32
    %c0_i32_0 = arith.constant 0 : i32
    return %c0_i32, %arg1 : i32, i32
  }
  func.func @transform_2(%arg0: i32, %arg1: i32) -> (i32, i32) {
    %c0_i32 = arith.constant 0 : i32
    %c0_i32_0 = arith.constant 0 : i32
    return %arg1, %c0_i32 : i32, i32
  }
  func.func @transform_3(%arg0: i32, %arg1: i32) -> (i32, i32) {
    %c0_i32 = arith.constant 0 : i32
    %c0_i32_0 = arith.constant 0 : i32
    return %arg0, %c0_i32 : i32, i32
  }
}

</mosaic_0001>

<bundles_post_ra>
// kernel: tpu_custom_call.1
= control target key start
LH: loop header
LB: loop body
LE: loop exit
PB: predicated region body
PF: predicated region fallthrough
CT: control target
= control target key end

     0   :  { %8 = vsyncpa [#allocation4], 0  ;;  %s3329_s0 = inlined_call_operand.hbm [shape: bf16[128,128], index: 0, kind: input, shape index: {}]   ;;  %s3330_s1 = inlined_call_operand.hbm [shape: bf16[128,512], index: 1, kind: input, shape index: {}]   ;;  %s3331_s2 = inlined_call_operand.hbm [shape: bf16[256,128], index: 2, kind: input, shape index: {}]   ;;  %s3332_s3 = inlined_call_operand.hbm [shape: f32[128,128], index: 3, kind: output, shape index: {}]  }
   0x1   :  { %9 = vsyncpa [#allocation7], 0  ;;  %s28_s14 = sshll.u32 %s3330_s1, 4  ;;  %s29_s14 = int_to_ptr.hbm [resolvable:$true] %s28_s14 }
   0x2   :  { %10 = vsyncpa [#allocation5], 0  ;;  %s2119_s15 = smov [#allocation6]   ;;  %s15_s19 = sshll.u32 %s3329_s0, 4  ;;  %s16_s19 = int_to_ptr.hbm [resolvable:$true] %s15_s19 }
   0x3   :  { %s30_s16 = sshll.u32 %s2119_s15, 4  ;;  %s2120_s20 = smov 256   ;;  %s31_s16 = int_to_ptr.vmem [resolvable:$true] %s30_s16 }
   0x4   :  { %s2121_s21 = smov 16   ;;  %s2122_s22 = smov [#allocation3]  }
   0x5   :  { %36 = dma.hbm_to_vmem [thread:$0]  %s29_s14, 4096, %s31_s16, [#allocation7], %s2120_s20, %s2120_s20, %s2121_s21  }
   0x6   :  { %s17_s23 = sshll.u32 %s2122_s22, 4  ;;  %s2123_s24 = smov 64   ;;  %s18_s23 = int_to_ptr.vmem [resolvable:$true] %s17_s23 }
   0x7   :  { %s2124_s25 = smov 4   ;;  %s41_s27 = sshll.u32 %s3331_s2, 4  ;;  %s42_s27 = int_to_ptr.hbm [resolvable:$true] %s41_s27 }
   0x8   :  { %23 = dma.hbm_to_vmem [thread:$0]  %s16_s19, 1024, %s18_s23, [#allocation4], %s2123_s24, %s2123_s24, %s2124_s25  }
   0x9   :  { %s2125_s28 = smov [#allocation8]  }
   0xa   :  { %s43_s29 = sshll.u32 %s2125_s28, 4  ;;  %s44_s29 = int_to_ptr.vmem [resolvable:$true] %s43_s29 }
   0xb   :  { %49 = dma.hbm_to_vmem [thread:$0]  %s42_s27, 2048, %s44_s29, [#allocation7], %s2123_s24, %s2123_s24, %s2124_s25  }
   0xc   :  { %2113 = dma.done.wait [#allocation4], 1024  }
   0xd   :  { %2114 = vsyncadd [#allocation4], 4294966272 }
   0xe   :  { %2115 = dma.done.wait [#allocation7], 6144  }
   0xf   :  { %2116 = vsyncadd [#allocation7], 4294961152  ;;  %v1697_v0 = vld [vmem:[#allocation6 + $0xe0] sm:$0xf]  ;;  %v1845_v1 = vld [vmem:[#allocation6 + $0xec] sm:$0xf0] }
  0x10   :  { %v1843_v2 = vld [vmem:[#allocation6 + $0xe4] sm:$0xf]  ;;  %v1698_v3 = vor.u32 %v1845_v1, %v1697_v0  ;;  %v1699_v4 = vld [vmem:[#allocation6 + $0xf0] sm:$0xf0]  ;;  %v1681_v5 = vld [vmem:[#allocation6 + $0xc0] sm:$0xf] }
  0x11   :  { %v1841_v6 = vld [vmem:[#allocation6 + $0xcc] sm:$0xf0]  ;;  %v1702_v7 = vor.u32 %v1843_v2, %v1699_v4  ;;  %v1839_v8 = vld [vmem:[#allocation6 + $0xc4] sm:$0xf]  ;;  %v1683_v9 = vld [vmem:[#allocation6 + $0xd0] sm:$0xf0] }
  0x12   :  { %1863 = vmatpush.bf16.msra.mxu2 %v1698_v3  ;;  %338 = vmatpush.bf16.msra.mxu0 %v1698_v3  ;;  %v1682_v10 = vor.u32 %v1841_v6, %v1681_v5  ;;  %v1686_v11 = vor.u32 %v1839_v8, %v1683_v9  ;;  %v1665_v12 = vld [vmem:[#allocation6 + $0xa0] sm:$0xf]  ;;  %v1837_v13 = vld [vmem:[#allocation6 + $0xac] sm:$0xf0]  ;;  %v1835_v14 = vld [vmem:[#allocation6 + $0xa4] sm:$0xf] }
  0x13   :  { %1871 = vmatpush.bf16.msra.mxu3 %v1702_v7  ;;  %387 = vmatpush.bf16.msra.mxu1 %v1702_v7  ;;  %v1667_v15 = vld [vmem:[#allocation6 + $0xb0] sm:$0xf0]  ;;  %v1666_v16 = vor.u32 %v1837_v13, %v1665_v12  ;;  %v1649_v18 = vld [vmem:[#allocation6 + $0x80] sm:$0xf]  ;;  %v1833_v19 = vld [vmem:[#allocation6 + $0x8c] sm:$0xf0] }
  0x14   :  { %v1670_v17 = vor.u32 %v1835_v14, %v1667_v15  ;;  %v1831_v20 = vld [vmem:[#allocation6 + $0x84] sm:$0xf]  ;;  %v1651_v21 = vld [vmem:[#allocation6 + $0x90] sm:$0xf0]  ;;  %v1650_v22 = vor.u32 %v1833_v19, %v1649_v18  ;;  %v1633_v24 = vld [vmem:[#allocation6 + $0x60] sm:$0xf] }
  0x15   :  { %v1654_v23 = vor.u32 %v1831_v20, %v1651_v21  ;;  %v1829_v25 = vld [vmem:[#allocation6 + $0x6c] sm:$0xf0]  ;;  %v1827_v26 = vld [vmem:[#allocation6 + $0x64] sm:$0xf]  ;;  %v1635_v27 = vld [vmem:[#allocation6 + $0x70] sm:$0xf0] }
  0x16   :  { %1864 = vmatpush.bf16.msra.mxu2 %v1682_v10  ;;  %339 = vmatpush.bf16.msra.mxu0 %v1682_v10  ;;  %v1634_v28 = vor.u32 %v1829_v25, %v1633_v24  ;;  %v1638_v29 = vor.u32 %v1827_v26, %v1635_v27  ;;  %v1617_v30 = vld [vmem:[#allocation6 + $0x40] sm:$0xf]  ;;  %v1825_v31 = vld [vmem:[#allocation6 + $0x4c] sm:$0xf0]  ;;  %v1823_v32 = vld [vmem:[#allocation6 + $0x44] sm:$0xf] }
  0x17   :  { %1872 = vmatpush.bf16.msra.mxu3 %v1686_v11  ;;  %388 = vmatpush.bf16.msra.mxu1 %v1686_v11  ;;  %v1619_v33 = vld [vmem:[#allocation6 + $0x50] sm:$0xf0]  ;;  %v1618_v34 = vor.u32 %v1825_v31, %v1617_v30  ;;  %v1601_v36 = vld [vmem:[#allocation6 + $0x20] sm:$0xf]  ;;  %v1821_v37 = vld [vmem:[#allocation6 + $0x2c] sm:$0xf0] }
  0x18   :  { %v1622_v35 = vor.u32 %v1823_v32, %v1619_v33  ;;  %v1819_v38 = vld [vmem:[#allocation6 + $0x24] sm:$0xf]  ;;  %v1603_v39 = vld [vmem:[#allocation6 + $0x30] sm:$0xf0]  ;;  %v1602_v40 = vor.u32 %v1821_v37, %v1601_v36  ;;  %v1585_v42 = vld [vmem:[#allocation6] sm:$0xf] }
  0x19   :  { %v1606_v41 = vor.u32 %v1819_v38, %v1603_v39  ;;  %v1817_v43 = vld [vmem:[#allocation6 + $0xc] sm:$0xf0]  ;;  %v1815_v44 = vld [vmem:[#allocation6 + $0x4] sm:$0xf]  ;;  %v1587_v45 = vld [vmem:[#allocation6 + $0x10] sm:$0xf0] }
  0x1a   :  { %1865 = vmatpush.bf16.msra.mxu2 %v1666_v16  ;;  %340 = vmatpush.bf16.msra.mxu0 %v1666_v16  ;;  %v1705_v46 = vld [vmem:[#allocation6 + $0xe8] sm:$0xf]  ;;  %v1846_v47 = vld [vmem:[#allocation6 + $0xf4] sm:$0xf0]  ;;  %v1844_v48 = vld [vmem:[#allocation6 + $0xec] sm:$0xf]  ;;  %v1586_v50 = vor.u32 %v1817_v43, %v1585_v42  ;;  %v1590_v51 = vor.u32 %v1815_v44, %v1587_v45 }
  0x1b   :  { %1873 = vmatpush.bf16.msra.mxu3 %v1670_v17  ;;  %389 = vmatpush.bf16.msra.mxu1 %v1670_v17  ;;  %v1707_v49 = vld [vmem:[#allocation6 + $0xf8] sm:$0xf0]  ;;  %v1706_v52 = vor.u32 %v1846_v47, %v1705_v46  ;;  %v2158_v53 = vld [vmem:[#allocation3 + $0x20] sm:$0xff]  ;;  %v1689_v55 = vld [vmem:[#allocation6 + $0xc8] sm:$0xf]  ;;  %s2126_s0 = smov [#allocation9]  }
  0x1c   :  { %v1710_v54 = vor.u32 %v1844_v48, %v1707_v49  ;;  %v1842_v56 = vld [vmem:[#allocation6 + $0xd4] sm:$0xf0]  ;;  %v2160_v57 = vld [vmem:[#allocation3] sm:$0xff]  ;;  %v1840_v58 = vld [vmem:[#allocation6 + $0xcc] sm:$0xf]  ;;  %s1535_s2 = sshll.u32 %s2126_s0, 4  ;;  %s1536_s2 = int_to_ptr.vmem [resolvable:$true] %s1535_s2 }
  0x1d   :  { %v1691_v59 = vld [vmem:[#allocation6 + $0xd8] sm:$0xf0]  ;;  %v1690_v60 = vor.u32 %v1842_v56, %v1689_v55  ;;  %v1673_v62 = vld [vmem:[#allocation6 + $0xa8] sm:$0xf]  ;;  %v1838_v63 = vld [vmem:[#allocation6 + $0xb4] sm:$0xf0] }
  0x1e   :  { %1866 = vmatpush.bf16.msra.mxu2 %v1650_v22  ;;  %341 = vmatpush.bf16.msra.mxu0 %v1650_v22  ;;  %v1694_v61 = vor.u32 %v1840_v58, %v1691_v59  ;;  %v1836_v0 = vld [vmem:[#allocation6 + $0xac] sm:$0xf]  ;;  %v1675_v1 = vld [vmem:[#allocation6 + $0xb8] sm:$0xf0]  ;;  %v1674_v2 = vor.u32 %v1838_v63, %v1673_v62  ;;  %v1657_v4 = vld [vmem:[#allocation6 + $0x88] sm:$0xf] }
  0x1f   :  { %1874 = vmatpush.bf16.msra.mxu3 %v1654_v23  ;;  %390 = vmatpush.bf16.msra.mxu1 %v1654_v23  ;;  %v1678_v3 = vor.u32 %v1836_v0, %v1675_v1  ;;  %v1834_v5 = vld [vmem:[#allocation6 + $0x94] sm:$0xf0]  ;;  %v1832_v6 = vld [vmem:[#allocation6 + $0x8c] sm:$0xf]  ;;  %v1659_v7 = vld [vmem:[#allocation6 + $0x98] sm:$0xf0] }
  0x20   :  { %v1658_v8 = vor.u32 %v1834_v5, %v1657_v4  ;;  %v1662_v9 = vor.u32 %v1832_v6, %v1659_v7  ;;  %v1641_v10 = vld [vmem:[#allocation6 + $0x68] sm:$0xf]  ;;  %v1830_v11 = vld [vmem:[#allocation6 + $0x74] sm:$0xf0]  ;;  %v1828_v12 = vld [vmem:[#allocation6 + $0x6c] sm:$0xf] }
  0x21   :  { %v1643_v13 = vld [vmem:[#allocation6 + $0x78] sm:$0xf0]  ;;  %v1642_v14 = vor.u32 %v1830_v11, %v1641_v10  ;;  %v1812_v15 = vld [vmem:[#allocation3 + $0x28] sm:$0xff]  ;;  %v1826_v18 = vld [vmem:[#allocation6 + $0x54] sm:$0xf0]  ;;  %s1537_s5 = sshll.u32 %s3332_s3, 4  ;;  %s1538_s5 = int_to_ptr.hbm [resolvable:$true] %s1537_s5 }
  0x22   :  { %1867 = vmatpush.bf16.msra.mxu2 %v1634_v28  ;;  %342 = vmatpush.bf16.msra.mxu0 %v1634_v28  ;;  %v1646_v16 = vor.u32 %v1828_v12, %v1643_v13  ;;  %v1625_v17 = vld [vmem:[#allocation6 + $0x48] sm:$0xf]  ;;  %v1824_v20 = vld [vmem:[#allocation6 + $0x4c] sm:$0xf]  ;;  %v1627_v21 = vld [vmem:[#allocation6 + $0x58] sm:$0xf0] }
  0x23   :  { %1875 = vmatpush.bf16.msra.mxu3 %v1638_v29  ;;  %391 = vmatpush.bf16.msra.mxu1 %v1638_v29  ;;  %v1808_v19 = vld [vmem:[#allocation3 + $0x8] sm:$0xff]  ;;  %v1626_v22 = vor.u32 %v1826_v18, %v1625_v17  ;;  %v1630_v23 = vor.u32 %v1824_v20, %v1627_v21  ;;  %v1822_v25 = vld [vmem:[#allocation6 + $0x34] sm:$0xf0]  ;;  %v1611_v28 = vld [vmem:[#allocation6 + $0x38] sm:$0xf0]  ;;  %s2127_s6 = smov 128  }
  0x24   :  { %v1609_v24 = vld [vmem:[#allocation6 + $0x28] sm:$0xf]  ;;  %v1820_v26 = vld [vmem:[#allocation6 + $0x2c] sm:$0xf]  ;;  %v1818_v31 = vld [vmem:[#allocation6 + $0x14] sm:$0xf0] }
  0x25   :  { %v1610_v27 = vor.u32 %v1822_v25, %v1609_v24  ;;  %v1614_v29 = vor.u32 %v1820_v26, %v1611_v28  ;;  %v1593_v30 = vld [vmem:[#allocation6 + $0x8] sm:$0xf]  ;;  %v1816_v32 = vld [vmem:[#allocation6 + $0xc] sm:$0xf]  ;;  %v1595_v33 = vld [vmem:[#allocation6 + $0x18] sm:$0xf0] }
  0x26   :  { %1868 = vmatpush.bf16.msra.mxu2 %v1618_v34  ;;  %343 = vmatpush.bf16.msra.mxu0 %v1618_v34  ;;  %v1594_v34 = vor.u32 %v1818_v31, %v1593_v30  ;;  %v1813_v36 = vld [vmem:[#allocation3 + $0x30] sm:$0xff]  ;;  %v1814_v38 = vld [vmem:[#allocation3 + $0x38] sm:$0xff]  ;;  %v1860_v55 = vld [vmem:[#allocation8 + $0x68] sm:$0xff]  ;;  %s2128_s7 = smov 8  }
  0x27   :  { %1876 = vmatpush.bf16.msra.mxu3 %v1622_v35  ;;  %392 = vmatpush.bf16.msra.mxu1 %v1622_v35  ;;  %v1598_v35 = vor.u32 %v1816_v32, %v1595_v33  ;;  %v1809_v37 = vld [vmem:[#allocation3 + $0x10] sm:$0xff]  ;;  %v1810_v39 = vld [vmem:[#allocation3 + $0x18] sm:$0xff]  ;;  %v1851_v1 = vld [vmem:[#allocation8 + $0x20] sm:$0xff] }
  0x28   :  { %v1853_v44 = vld [vmem:[#allocation8 + $0x30] sm:$0xff] }
  0x29   :  { %v1861_v45 = vld [vmem:[#allocation8 + $0x70] sm:$0xff] }
  0x2a   :  { %1869 = vmatpush.bf16.msra.mxu2 %v1602_v40  ;;  %344 = vmatpush.bf16.msra.mxu0 %v1602_v40  ;;  %v1854_v40 = vld [vmem:[#allocation8 + $0x38] sm:$0xff] }
  0x2b   :  { %1877 = vmatpush.bf16.msra.mxu3 %v1606_v41  ;;  %393 = vmatpush.bf16.msra.mxu1 %v1606_v41  ;;  %v1862_v41 = vld [vmem:[#allocation8 + $0x78] sm:$0xff] }
  0x2e   :  { %1870 = vmatpush.bf16.msra.mxu2 %v1586_v50  ;;  %345 = vmatpush.bf16.msra.mxu0 %v1586_v50 }
  0x2f   :  { %1878 = vmatpush.bf16.msra.mxu3 %v1590_v51  ;;  %394 = vmatpush.bf16.msra.mxu1 %v1590_v51 }
  0x31   :  { %366 = vmatmul.bf16.vlgmr.msra.gmra.mxu2 %v2158_v53  ;;  %346 = vmatmul.bf16.vlgmr.msra.gmra.mxu0 %v2160_v57 }
  0x32   :  { %436 = vmatpush.bf16.msrb.mxu2 %v1706_v52  ;;  %415 = vmatmul.bf16.vlgmr.msra.gmra.mxu3 %v2158_v53 }
  0x33   :  { %485 = vmatpush.bf16.msrb.mxu3 %v1710_v54  ;;  %395 = vmatmul.bf16.vlgmr.msra.gmra.mxu1 %v2160_v57  ;;  %v1852_v54 = vld [vmem:[#allocation8 + $0x28] sm:$0xff] }
  0x34   :  { %1366 = vmatpush.bf16.msrb.mxu0 %v1854_v40  ;;  %1415 = vmatpush.bf16.msrb.mxu1 %v1862_v41 }
  0x36   :  { %437 = vmatpush.bf16.msrb.mxu2 %v1690_v60 }
  0x37   :  { %486 = vmatpush.bf16.msrb.mxu3 %v1694_v61 }
  0x38   :  { %1367 = vmatpush.bf16.msrb.mxu0 %v1853_v44  ;;  %1416 = vmatpush.bf16.msrb.mxu1 %v1861_v45 }
  0x3a   :  { %438 = vmatpush.bf16.msrb.mxu2 %v1674_v2  ;;  %v1859_v2 = vld [vmem:[#allocation8 + $0x60] sm:$0xff] }
  0x3b   :  { %487 = vmatpush.bf16.msrb.mxu3 %v1678_v3 }
  0x3c   :  { %1368 = vmatpush.bf16.msrb.mxu0 %v1852_v54  ;;  %1417 = vmatpush.bf16.msrb.mxu1 %v1860_v55 }
  0x3e   :  { %439 = vmatpush.bf16.msrb.mxu2 %v1658_v8 }
  0x3f   :  { %488 = vmatpush.bf16.msrb.mxu3 %v1662_v9 }
  0x40   :  { %1369 = vmatpush.bf16.msrb.mxu0 %v1851_v1  ;;  %1418 = vmatpush.bf16.msrb.mxu1 %v1859_v2 }
  0x41   :  { %371 = vmatmul.bf16.gmra.mxu2 %v1812_v15  ;;  %351 = vmatmul.bf16.gmra.mxu0 %v1808_v19 }
  0x42   :  { %440 = vmatpush.bf16.msrb.mxu2 %v1642_v14  ;;  %420 = vmatmul.bf16.gmra.mxu3 %v1812_v15 }
  0x43   :  { %489 = vmatpush.bf16.msrb.mxu3 %v1646_v16  ;;  %400 = vmatmul.bf16.gmra.mxu1 %v1808_v19 }
  0x46   :  { %441 = vmatpush.bf16.msrb.mxu2 %v1626_v22  ;;  %v1850_v22 = vld [vmem:[#allocation8 + $0x18] sm:$0xff] }
  0x47   :  { %490 = vmatpush.bf16.msrb.mxu3 %v1630_v23  ;;  %v1858_v23 = vld [vmem:[#allocation8 + $0x58] sm:$0xff]  ;;  %1370 = vmatpush.bf16.msrb.mxu0 %v1850_v22 }
  0x48   :  { %1419 = vmatpush.bf16.msrb.mxu1 %v1858_v23  ;;  %v1849_v23 = vld [vmem:[#allocation8 + $0x10] sm:$0xff] }
  0x4a   :  { %442 = vmatpush.bf16.msrb.mxu2 %v1610_v27 }
  0x4b   :  { %491 = vmatpush.bf16.msrb.mxu3 %v1614_v29  ;;  %1371 = vmatpush.bf16.msrb.mxu0 %v1849_v23 }
  0x4e   :  { %443 = vmatpush.bf16.msrb.mxu2 %v1594_v34 }
  0x4f   :  { %492 = vmatpush.bf16.msrb.mxu3 %v1598_v35 }
  0x51   :  { %376 = vmatmul.bf16.gmra.mxu2 %v1813_v36  ;;  %356 = vmatmul.bf16.gmra.mxu0 %v1809_v37 }
  0x52   :  { %425 = vmatmul.bf16.gmra.mxu3 %v1813_v36 }
  0x53   :  { %405 = vmatmul.bf16.gmra.mxu1 %v1809_v37 }
  0x61   :  { %381 = vmatmul.bf16.gmra.mxu2 %v1814_v38  ;;  %361 = vmatmul.bf16.gmra.mxu0 %v1810_v39 }
  0x62   :  { %430 = vmatmul.bf16.gmra.mxu3 %v1814_v38 }
  0x63   :  { %410 = vmatmul.bf16.gmra.mxu1 %v1810_v39 }
  0x71   :  { %444 = vmatmul.bf16.vlgmr.msrb.gmra.mxu2 %v2160_v57 }
  0x72   :  { %493 = vmatmul.bf16.vlgmr.msrb.gmra.mxu3 %v2160_v57 }
  0x81   :  { %449 = vmatmul.bf16.gmra.mxu2 %v1808_v19 }
  0x82   :  { %498 = vmatmul.bf16.gmra.mxu3 %v1808_v19 }
  0x91   :  { %454 = vmatmul.bf16.gmra.mxu2 %v1809_v37 }
  0x92   :  { %503 = vmatmul.bf16.gmra.mxu3 %v1809_v37 }
  0xa1   :  { %459 = vmatmul.bf16.gmra.mxu2 %v1810_v39 }
  0xa2   :  { %508 = vmatmul.bf16.gmra.mxu3 %v1810_v39 }
  0xae   :  { %v2182_v50 = vpop.f32.mrf.mxu0 }
  0xaf   :  { %v1711_v52 = vmul.f32 -1.442695, %v2182_v50 }
  0xb0   :  { %v2184_v51 = vpop.f32.mrf.mxu1 }
  0xb1   :  { %464 = vmatmul.bf16.gmra.mxu2 %v2158_v53  ;;  %1889 = vpow2.f32 %v1711_v52 }
  0xb2   :  { %513 = vmatmul.bf16.gmra.mxu3 %v2158_v53  ;;  %v1712_v53 = vmul.f32 -1.442695, %v2184_v51 }
  0xb4   :  { %v2170_v42 = vpop.f32.mrf.mxu2  ;;  %1891 = vpow2.f32 %v1712_v53 }
  0xb5   :  { %v2172_v43 = vpop.f32.mrf.mxu3  ;;  %v1727_v58 = vmul.f32 -1.442695, %v2170_v42 }
  0xb6   :  { %v2193_v59 = vpop.f32.mrf.mxu0  ;;  %v1728_v61 = vmul.f32 -1.442695, %v2172_v43 }
  0xb7   :  { %1893 = vpow2.f32 %v1727_v58  ;;  %v1890_v62 = vpop.eup %1889  ;;  %v1713_v63 = vmul.f32 -1.442695, %v2193_v59 }
  0xb8   :  { %v2195_v60 = vpop.f32.mrf.mxu1  ;;  %v2200_v4 = vadd.f32 1.0, %v1890_v62  ;;  %1895 = vpow2.f32 %v1728_v61 }
  0xb9   :  { %v1714_v0 = vmul.f32 -1.442695, %v2195_v60  ;;  %1897 = vpow2.f32 %v1713_v63 }
  0xba   :  { %v1892_v3 = vpop.eup %1891  ;;  %v673_v28 = vand.u32 2147483648, %v2200_v4  ;;  %v671_v32 = vand.u32 2147483647, %v2200_v4  ;;  %vm667_vm0 = vweird.f32 %v2200_v4 }
  0xbb   :  { %1899 = vpow2.f32 %v1714_v0  ;;  %v2206_v8 = vadd.f32 1.0, %v1892_v3 }
  0xbc   :  { %v2174_v46 = vpop.f32.mrf.mxu2  ;;  %1901 = vrcp.f32 %v2200_v4  ;;  %v2256_v39 = vor.u32 1.1754944e-38, %v673_v28  ;;  %vm2271_vm2 = vcmp.eq.f32.partialorder %v671_v32, 8.507059e+37 }
  0xbd   :  { %v2176_v47 = vpop.f32.mrf.mxu3  ;;  %v1894_v7 = vpop.eup %1893  ;;  %v1729_v9 = vmul.f32 -1.442695, %v2174_v46  ;;  %1903 = vrcp.f32 %v2206_v8  ;;  %v688_v37 = vand.u32 2147483648, %v2206_v8  ;;  %vm682_vm1 = vweird.f32 %v2206_v8 }
  0xbe   :  { %3352 = vst [vmem:[#allocation13_spill] sm:$0xff] %v2176_v47  ;;  %v2210_v10 = vadd.f32 1.0, %v1894_v7  ;;  %v1896_v11 = vpop.eup %1895  ;;  %v2213_v14 = vpop.f32.mrf.mxu0  ;;  %v1730_v34 = vmul.f32 -1.442695, %v2176_v47  ;;  %v686_v61 = vand.u32 2147483647, %v2206_v8 }
  0xbf   :  { %v1898_v12 = vpop.eup %1897  ;;  %1905 = vpow2.f32 %v1729_v9  ;;  %v1715_v53 = vmul.f32 -1.442695, %v2213_v14  ;;  %v2279_v0 = vor.u32 1.1754944e-38, %v688_v37 }
  0xc0   :  { %1907 = vrcp.f32 %v2210_v10  ;;  %v2220_v17 = vadd.f32 1.0, %v1898_v12  ;;  %v2222_v18 = vpop.f32.mrf.mxu1  ;;  %v913_v40 = vand.u32 2147483648, %v2210_v10  ;;  %v911_v3 = vand.u32 2147483647, %v2210_v10 }
  0xc1   :  { %469 = vmatmul.bf16.gmra.mxu2 %v1812_v15  ;;  %v1900_v13 = vpop.eup %1899  ;;  %v1716_v2 = vmul.f32 -1.442695, %v2222_v18  ;;  %vm907_vm4 = vweird.f32 %v2210_v10  ;;  %vm2307_vm7 = vcmp.eq.f32.partialorder %v686_v61, 8.507059e+37 }
  0xc2   :  { %518 = vmatmul.bf16.gmra.mxu3 %v1812_v15  ;;  %v2216_v15 = vadd.f32 1.0, %v1896_v11  ;;  %v2218_v16 = vpop.eup %1901  ;;  %v2224_v19 = vadd.f32 1.0, %v1900_v13  ;;  %v2285_v7 = vor.u32 1.1754944e-38, %v913_v40  ;;  %vm697_vm8 = vweird.f32 %v2220_v17 }
  0xc3   :  { %v2230_v24 = vpop.eup %1903  ;;  %v663_v25 = vmul.f32 %v2218_v16, %v2200_v4  ;;  %vm668_vm3 = vweird.f32 %v2218_v16  ;;  %v701_v40 = vand.u32 2147483647, %v2220_v17  ;;  %vm2323_vm11 = vcmp.eq.f32.partialorder %v911_v3, 8.507059e+37 }
  0xc4   :  { %v2178_v48 = vpop.f32.mrf.mxu2  ;;  %1909 = vrcp.f32 %v2216_v15  ;;  %v678_v30 = vmul.f32 %v2230_v24, %v2206_v8  ;;  %v928_v22 = vand.u32 2147483648, %v2216_v15  ;;  %vm2298_vm5 = vmor %vm667_vm0, %vm668_vm3  ;;  %vm683_vm6 = vweird.f32 %v2230_v24 }
  0xc5   :  { %3353 = vst [vmem:[#allocation14_spill] sm:$0xff] %v2178_v48  ;;  %v2180_v49 = vpop.f32.mrf.mxu3  ;;  %v1906_v26 = vpop.eup %1905  ;;  %1911 = vrcp.f32 %v2220_v17  ;;  %v664_v29 = vsub.f32 1.0, %v663_v25  ;;  %v1857_v25 = vld [vmem:[#allocation8 + $0x50] sm:$0xff]  ;;  %vm712_vm9 = vweird.f32 %v2224_v19  ;;  %vm922_vm12 = vweird.f32 %v2216_v15  ;;  %vm2333_vm13 = vmor %vm682_vm1, %vm683_vm6 }
  0xc6   :  { %3354 = vst [vmem:[#allocation15_spill] sm:$0xff] %v2180_v49  ;;  %v2236_v27 = vpop.eup %1907  ;;  %1913 = vrcp.f32 %v2224_v19  ;;  %v2242_v31 = vadd.f32 1.0, %v1906_v26  ;;  %v2248_v35 = vpop.f32.mrf.mxu0  ;;  %v679_v52 = vsub.f32 1.0, %v678_v30  ;;  %1420 = vmatpush.bf16.msrb.mxu1 %v1857_v25  ;;  %v1732_v3 = vmul.f32 -1.442695, %v2180_v49 }
  0xc7   :  { %v903_v33 = vmul.f32 %v2236_v27, %v2210_v10  ;;  %v665_v45 = vmul.f32 %v2218_v16, %v664_v29  ;;  %v1717_v30 = vmul.f32 -1.442695, %v2248_v35  ;;  %vm908_vm10 = vweird.f32 %v2236_v27 }
  0xc8   :  { %v2260_v41 = vpop.f32.mrf.mxu1  ;;  %1915 = vrcp.f32 %v2242_v31  ;;  %v680_v13 = vmul.f32 %v2230_v24, %v679_v52  ;;  %vm2366_vm0 = vmor %vm907_vm4, %vm908_vm10  ;;  %vm2397_vm4 = vcmp.eq.f32.partialorder %v701_v40, 8.507059e+37 }
  0xc9   :  { %v904_v62 = vsub.f32 1.0, %v903_v33  ;;  %1917 = vpow2.f32 %v1730_v34  ;;  %v666_v12 = vadd.f32 %v2218_v16, %v665_v45  ;;  %v1718_v4 = vmul.f32 -1.442695, %v2260_v41 }
  0xca   :  { %1919 = vpow2.f32 %v1715_v53  ;;  %v703_v45 = vand.u32 2147483648, %v2220_v17 }
  0xcb   :  { %v905_v28 = vmul.f32 %v2236_v27, %v904_v62  ;;  %1921 = vpow2.f32 %v1716_v2  ;;  %v670_v61 = vsel %vm2298_vm5, %v2218_v16, %v666_v12  ;;  %v681_v62 = vadd.f32 %v2230_v24, %v680_v13 }
  0xcc   :  { %v2188_v56 = vpop.f32.mrf.mxu2  ;;  %1923 = vpow2.f32 %v1717_v30  ;;  %v718_v30 = vand.u32 2147483648, %v2224_v19  ;;  %v929_v2 = vor.u32 1.1754944e-38, %v928_v22 }
  0xcd   :  { %3355 = vst [vmem:[#allocation16_spill] sm:$0xff] %v2188_v56  ;;  %v2190_v57 = vpop.f32.mrf.mxu3  ;;  %v906_v16 = vadd.f32 %v2236_v27, %v905_v28  ;;  %1925 = vpow2.f32 %v1718_v4  ;;  %v685_v4 = vsel %vm2333_vm13, %v2230_v24, %v681_v62  ;;  %v3375_v62 = vand.u32 2147483647, %v2216_v15 }
  0xce   :  { %3356 = vst [vmem:[#allocation17_spill] sm:$0xff] %v2190_v57  ;;  %v2316_v53 = vpop.f32.mrf.mxu0  ;;  %v719_v40 = vor.u32 1.1754944e-38, %v718_v30  ;;  %v941_v30 = vand.u32 2147483647, %v2242_v31 }
  0xcf   :  { %3365 = vst [vmem:[#allocation20_spill] sm:$0xff] %v2316_v53  ;;  %v910_v24 = vsel %vm2366_vm0, %v2236_v27, %v906_v16 }
  0xd0   :  { %v2340_v12 = vpop.f32.mrf.mxu1  ;;  %v915_v22 = vsel %vm2323_vm11, %v2285_v7, %v910_v24  ;;  %vm2477_vm10 = vcmp.eq.f32.partialorder %v941_v30, 8.507059e+37 }
  0xd1   :  { %474 = vmatmul.bf16.gmra.mxu2 %v1813_v36  ;;  %3370 = vst [vmem:[#allocation21_spill] sm:$0xff] %v2340_v12 }
  0xd2   :  { %523 = vmatmul.bf16.gmra.mxu3 %v1813_v36  ;;  %v2250_v36 = vpop.eup %1909 }
  0xd3   :  { %v918_v63 = vmul.f32 %v2250_v36, %v2216_v15  ;;  %vm923_vm14 = vweird.f32 %v2250_v36 }
  0xd4   :  { %v2202_v5 = vpop.f32.mrf.mxu2 }
  0xd5   :  { %3357 = vst [vmem:[#allocation18_spill] sm:$0xff] %v2202_v5  ;;  %v2204_v6 = vpop.f32.mrf.mxu3  ;;  %v919_v29 = vsub.f32 1.0, %v918_v63 }
  0xdc   :  { %v2226_v20 = vpop.f32.mrf.mxu2 }
  0xdd   :  { %v2228_v21 = vpop.f32.mrf.mxu3 }
  0xe1   :  { %479 = vmatmul.bf16.gmra.mxu2 %v1814_v38 }
  0xe2   :  { %528 = vmatmul.bf16.gmra.mxu3 %v1814_v38  ;;  %v2253_v38 = vpop.eup %1911 }
  0xe3   :  { %v2262_v44 = vpop.eup %1913  ;;  %v693_v1 = vmul.f32 %v2253_v38, %v2220_v17  ;;  %vm698_vm15 = vweird.f32 %v2253_v38 }
  0xe4   :  { %v2267_v54 = vpop.f32.mrf.mxu2  ;;  %v708_v11 = vmul.f32 %v2262_v44, %v2224_v19  ;;  %v2305_v32 = vpop.eup %1915  ;;  %vm713_vm1 = vweird.f32 %v2262_v44  ;;  %vm2387_vm3 = vmor %vm697_vm8, %vm698_vm15 }
  0xe5   :  { %v2269_v55 = vpop.f32.mrf.mxu3  ;;  %v694_v34 = vsub.f32 1.0, %v693_v1  ;;  %v1918_v37 = vpop.eup %1917  ;;  %v1731_v1 = vmul.f32 -1.442695, %v2178_v48  ;;  %v933_v25 = vmul.f32 %v2305_v32, %v2242_v31  ;;  %vm2405_vm5 = vmor %vm712_vm9, %vm713_vm1  ;;  %vm938_vm9 = vweird.f32 %v2305_v32 }
  0xe6   :  { %3358 = vst [vmem:[#allocation19_spill] sm:$0xff] %v2269_v55  ;;  %v709_v52 = vsub.f32 1.0, %v708_v11  ;;  %v920_v11 = vmul.f32 %v2250_v36, %v919_v29  ;;  %v1920_v13 = vpop.eup %1919  ;;  %v2345_v8 = vadd.f32 1.0, %v1918_v37  ;;  %v716_v29 = vand.u32 2147483647, %v2224_v19  ;;  %vm2423_vm8 = vmor %vm922_vm12, %vm923_vm14 }
  0xe7   :  { %v695_v23 = vmul.f32 %v2253_v38, %v694_v34  ;;  %v1922_v49 = vpop.eup %1921  ;;  %v675_v34 = vsel %vm2271_vm2, %v2256_v39, %v670_v61  ;;  %1927 = vpow2.f32 %v1731_v1  ;;  %v2372_v39 = vadd.f32 1.0, %v1920_v13 }
  0xe8   :  { %v710_v28 = vmul.f32 %v2262_v44, %v709_v52  ;;  %v921_v52 = vadd.f32 %v2250_v36, %v920_v11  ;;  %1929 = vpow2.f32 %v1732_v3  ;;  %v934_v61 = vsub.f32 1.0, %v933_v25  ;;  %v1924_v10 = vpop.eup %1923 }
  0xe9   :  { %v696_v58 = vadd.f32 %v2253_v38, %v695_v23  ;;  %1931 = vrcp.f32 %v2345_v8  ;;  %vm2381_vm2 = vcmp.eq.f32.partialorder %v3375_v62, 8.507059e+37  ;;  %v2392_v16 = vadd.f32 1.0, %v1922_v49  ;;  %v1926_v3 = vpop.eup %1925  ;;  %v1848_v49 = vld [vmem:[#allocation8 + $0x8] sm:$0xff] }
  0xea   :  { %v711_v27 = vadd.f32 %v2262_v44, %v710_v28  ;;  %v2395_v13 = vmul.f32 %v675_v34, %v2182_v50  ;;  %v704_v25 = vor.u32 1.1754944e-38, %v703_v45  ;;  %vm2409_vm6 = vcmp.eq.f32.partialorder %v716_v29, 8.507059e+37  ;;  %v2428_v45 = vpop.f32.mrf.mxu0  ;;  %1372 = vmatpush.bf16.msrb.mxu0 %v1848_v49 }
  0xeb   :  { %v690_v50 = vsel %vm2307_vm7, %v2279_v0, %v685_v4  ;;  %1933 = vrcp.f32 %v2372_v39  ;;  %3388 = vst [vmem:[#allocation24_spill] sm:$0xff] %v2428_v45  ;;  %v925_v0 = vsel %vm2423_vm8, %v2250_v36, %v921_v52  ;;  %v700_v7 = vsel %vm2387_vm3, %v2253_v38, %v696_v58  ;;  %v2446_v36 = vpop.f32.mrf.mxu1 }
  0xec   :  { %v2347_v26 = vpop.f32.mrf.mxu2  ;;  %v935_v15 = vmul.f32 %v2305_v32, %v934_v61  ;;  %v2437_v33 = vadd.f32 1.0, %v1924_v10  ;;  %v715_v29 = vsel %vm2405_vm5, %v2262_v44, %v711_v27  ;;  %1935 = vrcp.f32 %v2392_v16  ;;  %3389 = vst [vmem:[#allocation25_spill] sm:$0xff] %v2446_v36 }
  0xed   :  { %3371 = vst [vmem:[#allocation22_spill] sm:$0xff] %v2347_v26  ;;  %v2349_v9 = vpop.f32.mrf.mxu3  ;;  %v1928_v28 = vpop.eup %1927  ;;  %v2444_v34 = vadd.f32 1.0, %v1926_v3  ;;  %v2451_v38 = vmul.f32 %v690_v50, %v2184_v51  ;;  %v2454_v37 = vmul.f32 %v915_v22, %v2170_v42  ;;  %vm937_vm7 = vweird.f32 %v2242_v31  ;;  %v1856_v50 = vld [vmem:[#allocation8 + $0x48] sm:$0xff] }
  0xee   :  { %3372 = vst [vmem:[#allocation23_spill] sm:$0xff] %v2349_v9  ;;  %v1930_v63 = vpop.eup %1929  ;;  %v943_v44 = vand.u32 2147483648, %v2242_v31  ;;  %v930_v58 = vsel %vm2381_vm2, %v929_v2, %v925_v0  ;;  %v705_v61 = vsel %vm2397_vm4, %v704_v25, %v700_v7  ;;  %v2467_v51 = vadd.f32 1.0, %v1928_v28  ;;  %vm2501_vm11 = vmor %vm937_vm7, %vm938_vm9  ;;  %1421 = vmatpush.bf16.msrb.mxu1 %v1856_v50 }
  0xef   :  { %v2448_v4 = vpop.eup %1931  ;;  %3390 = vst [vmem:[#allocation26_spill] sm:$0xff] %v2454_v37  ;;  %v720_v42 = vsel %vm2409_vm6, %v719_v40, %v715_v29  ;;  %v936_v10 = vadd.f32 %v2305_v32, %v935_v15  ;;  %v2472_v62 = vadd.f32 1.0, %v1930_v63  ;;  %1937 = vrcp.f32 %v2437_v33 }
  0xf0   :  { %3391 = vst [vmem:[#allocation27_spill] sm:$0xff] %v2467_v51  ;;  %v948_v2 = vmul.f32 %v2448_v4, %v2345_v8  ;;  %1939 = vrcp.f32 %v2444_v34  ;;  %v1719_v27 = vmul.f32 -1.442695, %v2316_v53  ;;  %v2486_v3 = vmul.f32 %v930_v58, %v2172_v43  ;;  %v1847_v58 = vld [vmem:[#allocation8] sm:$0xff] }
  0xf1   :  { %v2475_v11 = vpop.eup %1933  ;;  %v2489_v23 = vmul.f32 %v705_v61, %v2193_v59  ;;  %v944_v25 = vor.u32 1.1754944e-38, %v943_v44  ;;  %v1721_v17 = vmul.f32 -1.442695, %v2428_v45  ;;  %v2495_v19 = vmul.f32 %v720_v42, %v2195_v60  ;;  %v1855_v61 = vld [vmem:[#allocation8 + $0x40] sm:$0xff]  ;;  %1373 = vmatpush.bf16.msrb.mxu0 %v1847_v58 }
  0xf2   :  { %3394 = vst [vmem:[#allocation28_spill] sm:$0xff] %v2486_v3  ;;  %v2492_v22 = vpop.eup %1935  ;;  %1941 = vrcp.f32 %v2467_v51  ;;  %v2507_v59 = vmul.f32 -1.442695, %v2188_v56  ;;  %v1720_v40 = vmul.f32 -1.442695, %v2340_v12  ;;  %v940_v60 = vsel %vm2501_vm11, %v2305_v32, %v936_v10  ;;  %v2521_v63 = vpop.f32.mrf.mxu0  ;;  %1422 = vmatpush.bf16.msrb.mxu1 %v1855_v61 }
  0xf3   :  { %v723_v28 = vmul.f32 %v2475_v11, %v2372_v39  ;;  %1943 = vrcp.f32 %v2472_v62  ;;  %v1722_v31 = vmul.f32 -1.442695, %v2446_v36  ;;  %v949_v0 = vsub.f32 1.0, %v948_v2  ;;  %3397 = vst [vmem:[#allocation29_spill] sm:$0xff] %v2521_v63  ;;  %v2541_v50 = vpop.f32.mrf.mxu1 }
  0xf4   :  { %v2458_v52 = vpop.f32.mrf.mxu2  ;;  %v958_v7 = vand.u32 2147483648, %v2345_v8  ;;  %v2519_v15 = vmul.f32 -1.442695, %v2190_v57  ;;  %1945 = vpow2.f32 %v1719_v27  ;;  %v733_v32 = vand.u32 2147483648, %v2372_v39  ;;  %3398 = vst [vmem:[#allocation30_spill] sm:$0xff] %v2541_v50 }
  0xf5   :  { %v2460_v24 = vpop.f32.mrf.mxu3  ;;  %v2523_v29 = vpop.eup %1937  ;;  %v738_v30 = vmul.f32 %v2492_v22, %v2392_v16  ;;  %v2529_v44 = vmul.f32 -1.442695, %v2202_v5  ;;  %1947 = vpow2.f32 %v1721_v17  ;;  %v945_v27 = vsel %vm2477_vm10, %v944_v25, %v940_v60 }
  0xf6   :  { %v2535_v2 = vpop.eup %1939  ;;  %vm952_vm12 = vweird.f32 %v2345_v8  ;;  %v956_v49 = vand.u32 2147483647, %v2345_v8  ;;  %1949 = vpow2.f32 %v1720_v40  ;;  %v724_v43 = vsub.f32 1.0, %v723_v28 }
  0xf7   :  { %v731_v17 = vand.u32 2147483647, %v2372_v39  ;;  %v748_v5 = vand.u32 2147483648, %v2392_v16  ;;  %1951 = vpow2.f32 %v1722_v31  ;;  %v950_v1 = vmul.f32 %v2448_v4, %v949_v0 }
  0xf8   :  { %v2545_v57 = vpop.eup %1941  ;;  %v2548_v25 = vor.u32 1.1754944e-38, %v958_v7  ;;  %vm727_vm13 = vweird.f32 %v2372_v39  ;;  %v973_v40 = vand.u32 2147483648, %v2467_v51  ;;  %v753_v60 = vmul.f32 %v2523_v29, %v2437_v33 }
  0xf9   :  { %v2554_v28 = vpop.eup %1943  ;;  %v2557_v56 = vmul.f32 %v945_v27, %v2174_v46  ;;  %v2559_v31 = vor.u32 1.1754944e-38, %v733_v32  ;;  %v739_v58 = vsub.f32 1.0, %v738_v30  ;;  %v768_v0 = vmul.f32 %v2535_v2, %v2444_v34 }
  0xfa   :  { %v1946_v7 = vpop.eup %1945  ;;  %vm953_vm14 = vweird.f32 %v2448_v4  ;;  %vm742_vm15 = vweird.f32 %v2392_v16  ;;  %v746_v61 = vand.u32 2147483647, %v2392_v16  ;;  %v725_v37 = vmul.f32 %v2475_v11, %v724_v43 }
  0xfb   :  { %3399 = vst [vmem:[#allocation31_spill] sm:$0xff] %v2557_v56  ;;  %v1948_v3 = vpop.eup %1947  ;;  %vm728_vm0 = vweird.f32 %v2475_v11  ;;  %v2569_v46 = vor.u32 1.1754944e-38, %v748_v5  ;;  %v2573_v32 = vmul.f32 %v2545_v57, %v2467_v51  ;;  %v2576_v27 = vadd.f32 %v2448_v4, %v950_v1  ;;  %vm2600_vm3 = vmor %vm952_vm12, %vm953_vm14  ;;  %v2628_v36 = vpop.f32.mrf.mxu1 }
  0xfc   :  { %v2531_v42 = vpop.f32.mrf.mxu2  ;;  %v1950_v30 = vpop.eup %1949  ;;  %v2578_v56 = vor.u32 1.1754944e-38, %v973_v40  ;;  %v754_v48 = vsub.f32 1.0, %v753_v60  ;;  %v740_v43 = vmul.f32 %v2492_v22, %v739_v58  ;;  %vm757_vm1 = vweird.f32 %v2437_v33  ;;  %3408 = vst [vmem:[#allocation34_spill] sm:$0xff] %v2628_v36  ;;  %vm2646_vm9 = vmor %vm727_vm13, %vm728_vm0 }
  0xfd   :  { %v2533_v10 = vpop.f32.mrf.mxu3  ;;  %v1952_v26 = vpop.eup %1951  ;;  %v769_v5 = vsub.f32 1.0, %v768_v0  ;;  %v2583_v47 = vadd.f32 1.0, %v1946_v7  ;;  %vm743_vm2 = vweird.f32 %v2492_v22  ;;  %v761_v1 = vand.u32 2147483647, %v2437_v33 }
  0xfe   :  { %3400 = vst [vmem:[#allocation32_spill] sm:$0xff] %v2578_v56  ;;  %1953 = vpow2.f32 %v2507_v59  ;;  %v2592_v40 = vadd.f32 1.0, %v1948_v3  ;;  %v2594_v60 = vpop.f32.mrf.mxu0  ;;  %v726_v0 = vadd.f32 %v2475_v11, %v725_v37  ;;  %vm2605_vm4 = vcmp.eq.f32.partialorder %v731_v17, 8.507059e+37  ;;  %vm2658_vm11 = vmor %vm742_vm15, %vm743_vm2 }
  0xff   :  { %3401 = vst [vmem:[#allocation33_spill] sm:$0xff] %v2594_v60  ;;  %vm2609_vm5 = vcmp.eq.f32.partialorder %v746_v61, 8.507059e+37  ;;  %v763_v9 = vand.u32 2147483648, %v2437_v33  ;;  %v2615_v56 = vadd.f32 1.0, %v1950_v30  ;;  %v955_v8 = vsel %vm2600_vm3, %v2448_v4, %v2576_v27 }
 0x100   :  { %v2623_v37 = vmul.f32 %v2554_v28, %v2472_v62  ;;  %v755_v17 = vmul.f32 %v2523_v29, %v754_v48  ;;  %v2626_v61 = vadd.f32 1.0, %v1952_v26  ;;  %vm2630_vm6 = vcmp.eq.f32.partialorder %v956_v49, 8.507059e+37 }
 0x101   :  { %v741_v30 = vadd.f32 %v2492_v22, %v740_v43  ;;  %v770_v12 = vmul.f32 %v2535_v2, %v769_v5  ;;  %1955 = vrcp.f32 %v2583_v47  ;;  %v1725_v4 = vmul.f32 -1.442695, %v2594_v60 }
 0x102   :  { %vm758_vm8 = vweird.f32 %v2523_v29  ;;  %vm772_vm7 = vweird.f32 %v2444_v34  ;;  %1957 = vrcp.f32 %v2592_v40  ;;  %v1723_v48 = vmul.f32 -1.442695, %v2521_v63 }
 0x103   :  { %vm773_vm10 = vweird.f32 %v2535_v2  ;;  %v776_v49 = vand.u32 2147483647, %v2444_v34  ;;  %1959 = vrcp.f32 %v2615_v56  ;;  %v1726_v27 = vmul.f32 -1.442695, %v2628_v36  ;;  %vm2670_vm12 = vmor %vm757_vm1, %vm758_vm8 }
 0x104   :  { %v2585_v55 = vpop.f32.mrf.mxu2  ;;  %v1954_v43 = vpop.eup %1953  ;;  %v756_v39 = vadd.f32 %v2523_v29, %v755_v17  ;;  %v778_v58 = vand.u32 2147483648, %v2444_v34  ;;  %1961 = vrcp.f32 %v2626_v61  ;;  %v1724_v63 = vmul.f32 -1.442695, %v2541_v50  ;;  %vm2693_vm14 = vmor %vm772_vm7, %vm773_vm10 }
 0x105   :  { %v2587_v51 = vpop.f32.mrf.mxu3  ;;  %vm2674_vm13 = vcmp.eq.f32.partialorder %v761_v1, 8.507059e+37  ;;  %v771_v17 = vadd.f32 %v2535_v2, %v770_v12  ;;  %1963 = vpow2.f32 %v1725_v4  ;;  %v1176_v60 = vmul.f32 %v2489_v23, %v2531_v42 }
 0x106   :  { %v730_v33 = vsel %vm2646_vm9, %v2475_v11, %v726_v0  ;;  %v979_v45 = vsub.f32 1.0, %v2623_v37  ;;  %v764_v1 = vor.u32 1.1754944e-38, %v763_v9  ;;  %1965 = vpow2.f32 %v1723_v48 }
 0x107   :  { %v2697_v23 = vpop.eup %1955  ;;  %v745_v42 = vsel %vm2658_vm11, %v2492_v22, %v741_v30  ;;  %v2702_v4 = vadd.f32 1.0, %v1954_v43  ;;  %1967 = vpow2.f32 %v1726_v27  ;;  %v1174_v9 = vmul.f32 %v2395_v13, %v2458_v52 }
 0x108   :  { %v2706_v11 = vpop.eup %1957  ;;  %v760_v34 = vsel %vm2670_vm12, %v2523_v29, %v756_v39  ;;  %vm2711_vm15 = vcmp.eq.f32.partialorder %v776_v49, 8.507059e+37  ;;  %v779_v37 = vor.u32 1.1754944e-38, %v778_v58  ;;  %1969 = vpow2.f32 %v1724_v63 }
 0x109   :  { %v2715_v48 = vpop.eup %1959  ;;  %v775_v22 = vsel %vm2693_vm14, %v2535_v2, %v771_v17  ;;  %v1175_v13 = vmul.f32 %v2451_v38, %v2460_v24  ;;  %v1222_v52 = vpack.c.bf16 %v1176_v60, %v1174_v9  ;;  %v1177_v36 = vmul.f32 %v2495_v19, %v2533_v10 }
 0x10a   :  { %v2724_v29 = vpop.eup %1961  ;;  %v2729_v30 = vsel %vm2630_vm6, %v2548_v25, %v955_v8  ;;  %v735_v63 = vsel %vm2605_vm4, %v2559_v31, %v730_v33  ;;  %v750_v2 = vsel %vm2609_vm5, %v2569_v46, %v745_v42  ;;  %v988_v38 = vand.u32 2147483648, %v2472_v62 }
 0x10b   :  { %v1964_v24 = vpop.eup %1963  ;;  %v765_v19 = vsel %vm2674_vm13, %v764_v1, %v760_v34  ;;  %v783_v10 = vmul.f32 %v2697_v23, %v2583_v47  ;;  %v813_v25 = vmul.f32 %v2706_v11, %v2592_v40  ;;  %v1223_v60 = vpack.c.bf16 %v1177_v36, %v1175_v13  ;;  %1374 = vmatmul.bf16.vlgmr.msrb.gmra.mxu0 %v1222_v52 }
 0x10c   :  { %v2681_v53 = vpop.f32.mrf.mxu2  ;;  %v1966_v7 = vpop.eup %1965  ;;  %v3423_v31 = vsub.f32 1.0, %v2573_v32  ;;  %v780_v46 = vsel %vm2711_vm15, %v779_v37, %v775_v22  ;;  %1971 = vpow2.f32 %v2519_v15  ;;  %v798_v3 = vmul.f32 %v2715_v48, %v2615_v56 }
 0x10d   :  { %v2683_v50 = vpop.f32.mrf.mxu3  ;;  %v1968_v8 = vpop.eup %1967  ;;  %v1146_v26 = vmul.f32 %v735_v63, %v2213_v14  ;;  %v2756_v49 = vmul.f32 %v2554_v28, %v979_v45  ;;  %1973 = vrcp.f32 %v2702_v4  ;;  %v828_v32 = vmul.f32 %v2724_v29, %v2626_v61  ;;  %1423 = vmatmul.bf16.vlgmr.msrb.gmra.mxu1 %v1223_v60 }
 0x10e   :  { %v2747_v59 = vmul.f32 %v2545_v57, %v3423_v31  ;;  %v1970_v15 = vpop.eup %1969  ;;  %v1147_v5 = vmul.f32 %v750_v2, %v2222_v18  ;;  %v1148_v39 = vmul.f32 %v765_v19, %v2248_v35  ;;  %1975 = vpow2.f32 %v2529_v44 }
 0x10f   :  { %v2768_v14 = vadd.f32 1.0, %v1964_v24  ;;  %v1149_v45 = vmul.f32 %v780_v46, %v2260_v41  ;;  %v784_v58 = vsub.f32 1.0, %v783_v10  ;;  %v814_v16 = vsub.f32 1.0, %v813_v25 }
 0x110   :  { %v2771_v17 = vadd.f32 1.0, %v1966_v7  ;;  %vm787_vm0 = vweird.f32 %v2583_v47  ;;  %v791_v33 = vand.u32 2147483647, %v2583_v47  ;;  %v799_v1 = vsub.f32 1.0, %v798_v3 }
 0x111   :  { %v2775_v12 = vadd.f32 1.0, %v1968_v8  ;;  %v793_v18 = vand.u32 2147483648, %v2583_v47  ;;  %vm802_vm1 = vweird.f32 %v2615_v56  ;;  %v829_v35 = vsub.f32 1.0, %v828_v32  ;;  %v3437_v47 = vld [vmem:[#allocation20_spill] sm:$0xff]  ;;  %v3438_v32 = vld [vmem:[#allocation21_spill] sm:$0xff] }
 0x112   :  { %v2779_v44 = vadd.f32 1.0, %v1970_v15  ;;  %v1972_v42 = vpop.eup %1971  ;;  %vm788_vm2 = vweird.f32 %v2697_v23  ;;  %v806_v41 = vand.u32 2147483647, %v2615_v56  ;;  %v808_v9 = vand.u32 2147483648, %v2615_v56 }
 0x113   :  { %1977 = vrcp.f32 %v2768_v14  ;;  %v2785_v34 = vpop.eup %1973  ;;  %v785_v0 = vmul.f32 %v2697_v23, %v784_v58  ;;  %v815_v37 = vmul.f32 %v2706_v11, %v814_v16  ;;  %v1180_v22 = vmul.f32 %v1148_v39, %v2681_v53  ;;  %vm2813_vm8 = vmor %vm787_vm0, %vm788_vm2 }
 0x114   :  { %v2761_v27 = vpop.f32.mrf.mxu2  ;;  %1979 = vrcp.f32 %v2771_v17  ;;  %v2791_v13 = vpop.eup %1975  ;;  %v800_v52 = vmul.f32 %v2715_v48, %v799_v1  ;;  %vm817_vm3 = vweird.f32 %v2592_v40  ;;  %vm818_vm4 = vweird.f32 %v2706_v11 }
 0x115   :  { %v2763_v43 = vpop.f32.mrf.mxu3  ;;  %1981 = vrcp.f32 %v2775_v12  ;;  %v830_v36 = vmul.f32 %v2724_v29, %v829_v35  ;;  %v1178_v63 = vmul.f32 %v1146_v26, %v2585_v55  ;;  %v1181_v2 = vmul.f32 %v1149_v45, %v2683_v50  ;;  %vm2829_vm9 = vmor %vm817_vm3, %vm818_vm4 }
 0x116   :  { %1983 = vrcp.f32 %v2779_v44  ;;  %vm803_vm5 = vweird.f32 %v2715_v48  ;;  %v821_v19 = vand.u32 2147483647, %v2592_v40  ;;  %v823_v10 = vand.u32 2147483648, %v2592_v40 }
 0x117   :  { %vm832_vm6 = vweird.f32 %v2626_v61  ;;  %v816_v50 = vadd.f32 %v2706_v11, %v815_v37  ;;  %vm833_vm7 = vweird.f32 %v2724_v29  ;;  %v1179_v25 = vmul.f32 %v1147_v5, %v2587_v51  ;;  %vm2842_vm10 = vmor %vm802_vm1, %vm803_vm5 }
 0x118   :  { %v1224_v60 = vpack.c.bf16 %v1180_v22, %v1178_v63  ;;  %v786_v31 = vadd.f32 %v2697_v23, %v785_v0  ;;  %v801_v46 = vadd.f32 %v2715_v48, %v800_v52  ;;  %v1736_v3 = vmul.f32 -1.442695, %v2204_v6  ;;  %vm2862_vm13 = vmor %vm832_vm6, %vm833_vm7 }
 0x119   :  { %v2820_v7 = vpop.eup %1977  ;;  %v838_v8 = vand.u32 2147483648, %v2626_v61  ;;  %v2836_v26 = vadd.f32 1.0, %v1972_v42  ;;  %v831_v40 = vadd.f32 %v2724_v29, %v830_v36  ;;  %v836_v15 = vand.u32 2147483647, %v2626_v61 }
 0x11a   :  { %v2834_v51 = vpop.eup %1979  ;;  %v1225_v5 = vpack.c.bf16 %v1181_v2, %v1179_v25  ;;  %vm2850_vm11 = vcmp.eq.f32.partialorder %v791_v33, 8.507059e+37  ;;  %v794_v58 = vor.u32 1.1754944e-38, %v793_v18  ;;  %vm2854_vm12 = vcmp.eq.f32.partialorder %v806_v41, 8.507059e+37 }
 0x11b   :  { %v2848_v39 = vpop.eup %1981  ;;  %v824_v56 = vor.u32 1.1754944e-38, %v823_v10  ;;  %v809_v33 = vor.u32 1.1754944e-38, %v808_v9  ;;  %v820_v18 = vsel %vm2829_vm9, %v2706_v11, %v816_v50  ;;  %vm822_vm14 = vcmp.eq.f32.partialorder %v821_v19, 8.507059e+37  ;;  %1379 = vmatmul.bf16.gmra.mxu0 %v1224_v60 }
 0x11c   :  { %v2801_v24 = vpop.f32.mrf.mxu2  ;;  %v2866_v35 = vpop.eup %1983  ;;  %v873_v42 = vmul.f32 %v2820_v7, %v2768_v14  ;;  %v790_v61 = vsel %vm2813_vm8, %v2697_v23, %v786_v31  ;;  %v805_v41 = vsel %vm2842_vm10, %v2715_v48, %v801_v46  ;;  %v839_v0 = vor.u32 1.1754944e-38, %v838_v8  ;;  %v3436_v31 = vld [vmem:[#allocation24_spill] sm:$0xff] }
 0x11d   :  { %v2803_v53 = vpop.f32.mrf.mxu3  ;;  %v843_v9 = vmul.f32 %v2834_v51, %v2771_v17  ;;  %v835_v11 = vsel %vm2862_vm13, %v2724_v29, %v831_v40  ;;  %vm837_vm15 = vcmp.eq.f32.partialorder %v836_v15, 8.507059e+37  ;;  %v1737_v37 = vmul.f32 -1.442695, %v2226_v20  ;;  %1428 = vmatmul.bf16.gmra.mxu1 %v1225_v5  ;;  %v3439_v5 = vld [vmem:[#allocation25_spill] sm:$0xff] }
 0x11e   :  { %v888_v22 = vmul.f32 %v2848_v39, %v2775_v12  ;;  %1985 = vpow2.f32 %v1736_v3  ;;  %v825_v48 = vsel %vm822_vm14, %v824_v56, %v820_v18  ;;  %v1738_v36 = vmul.f32 -1.442695, %v2228_v21 }
 0x11f   :  { %v858_v63 = vmul.f32 %v2866_v35, %v2779_v44  ;;  %v2896_v29 = vmul.f32 %v2785_v34, %v2702_v4  ;;  %v795_v2 = vsel %vm2850_vm11, %v794_v58, %v790_v61  ;;  %v810_v19 = vsel %vm2854_vm12, %v809_v33, %v805_v41 }
 0x120   :  { %v874_v10 = vsub.f32 1.0, %v873_v42  ;;  %1987 = vrcp.f32 %v2836_v26  ;;  %v840_v55 = vsel %vm837_vm15, %v839_v0, %v835_v11  ;;  %v844_v50 = vsub.f32 1.0, %v843_v9 }
 0x121   :  { %v2904_v25 = vmul.f32 -1.442695, %v2267_v54  ;;  %v2907_v60 = vadd.f32 1.0, %v2791_v13  ;;  %v1152_v46 = vmul.f32 %v825_v48, %v3436_v31  ;;  %1989 = vpow2.f32 %v1737_v37 }
 0x122   :  { %v889_v3 = vsub.f32 1.0, %v888_v22  ;;  %v1150_v8 = vmul.f32 %v795_v2, %v3437_v47  ;;  %v1151_v40 = vmul.f32 %v810_v19, %v3438_v32  ;;  %1991 = vpow2.f32 %v1738_v36 }
 0x123   :  { %v859_v15 = vsub.f32 1.0, %v858_v63  ;;  %v1153_v45 = vmul.f32 %v840_v55, %v3439_v5  ;;  %vm847_vm0 = vweird.f32 %v2771_v17  ;;  %v875_v58 = vmul.f32 %v2820_v7, %v874_v10 }
 0x124   :  { %v2887_v23 = vpop.f32.mrf.mxu2  ;;  %v1184_v16 = vmul.f32 %v1152_v46, %v2801_v24  ;;  %v1986_v13 = vpop.eup %1985  ;;  %v845_v56 = vmul.f32 %v2834_v51, %v844_v50  ;;  %vm848_vm1 = vweird.f32 %v2834_v51  ;;  %v851_v1 = vand.u32 2147483647, %v2771_v17 }
 0x125   :  { %v2889_v52 = vpop.f32.mrf.mxu3  ;;  %vm877_vm2 = vweird.f32 %v2768_v14  ;;  %vm878_vm3 = vweird.f32 %v2820_v7  ;;  %v890_v33 = vmul.f32 %v2848_v39, %v889_v3  ;;  %v1182_v18 = vmul.f32 %v1150_v8, %v2761_v27  ;;  %vm2954_vm9 = vmor %vm847_vm0, %vm848_vm1 }
 0x126   :  { %v1185_v42 = vmul.f32 %v1153_v45, %v2803_v53  ;;  %v2928_v41 = vpop.eup %1987  ;;  %v860_v0 = vmul.f32 %v2866_v35, %v859_v15  ;;  %v881_v9 = vand.u32 2147483647, %v2768_v14  ;;  %v883_v11 = vand.u32 2147483648, %v2768_v14  ;;  %vm2944_vm7 = vmor %vm877_vm2, %vm878_vm3 }
 0x127   :  { %vm892_vm4 = vweird.f32 %v2775_v12  ;;  %v1990_v37 = vpop.eup %1989  ;;  %v876_v22 = vadd.f32 %v2820_v7, %v875_v58  ;;  %vm893_vm5 = vweird.f32 %v2848_v39  ;;  %v1183_v27 = vmul.f32 %v1151_v40, %v2763_v43 }
 0x128   :  { %v1226_v53 = vpack.c.bf16 %v1184_v16, %v1182_v18  ;;  %v1992_v48 = vpop.eup %1991  ;;  %v853_v36 = vand.u32 2147483648, %v2771_v17  ;;  %vm862_vm6 = vweird.f32 %v2779_v44  ;;  %vm863_vm8 = vweird.f32 %v2866_v35  ;;  %vm2969_vm10 = vmor %vm892_vm4, %vm893_vm5 }
 0x129   :  { %v898_v2 = vand.u32 2147483648, %v2775_v12  ;;  %v846_v43 = vadd.f32 %v2834_v51, %v845_v56  ;;  %v891_v10 = vadd.f32 %v2848_v39, %v890_v33  ;;  %v896_v14 = vand.u32 2147483647, %v2775_v12  ;;  %vm2991_vm13 = vmor %vm862_vm6, %vm863_vm8 }
 0x12a   :  { %v1227_v55 = vpack.c.bf16 %v1185_v42, %v1183_v27  ;;  %v1008_v50 = vmul.f32 %v2928_v41, %v2836_v26  ;;  %v2962_v31 = vadd.f32 1.0, %v1986_v13  ;;  %v868_v46 = vand.u32 2147483648, %v2779_v44 }
 0x12b   :  { %v884_v3 = vor.u32 1.1754944e-38, %v883_v11  ;;  %vm968_vm11 = vweird.f32 %v2545_v57  ;;  %v861_v47 = vadd.f32 %v2866_v35, %v860_v0  ;;  %v866_v8 = vand.u32 2147483647, %v2779_v44  ;;  %1384 = vmatmul.bf16.gmra.mxu0 %v1226_v53  ;;  %v3457_v53 = vld [vmem:[#allocation33_spill] sm:$0xff]  ;;  %v3471_v44 = vld [vmem:[#allocation26_spill] sm:$0xff] }
 0x12c   :  { %v2924_v61 = vpop.f32.mrf.mxu2  ;;  %v880_v32 = vsel %vm2944_vm7, %v2820_v7, %v876_v22  ;;  %vm2979_vm12 = vcmp.eq.f32.partialorder %v881_v9, 8.507059e+37  ;;  %v2983_v12 = vadd.f32 1.0, %v1990_v37  ;;  %v2985_v15 = vadd.f32 1.0, %v1992_v48  ;;  %v3450_v7 = vld [vmem:[#allocation27_spill] sm:$0xff]  ;;  %v3456_v22 = vld [vmem:[#allocation13_spill] sm:$0xff] }
 0x12d   :  { %v2926_v24 = vpop.f32.mrf.mxu3  ;;  %v854_v5 = vor.u32 1.1754944e-38, %v853_v36  ;;  %v899_v58 = vor.u32 1.1754944e-38, %v898_v2  ;;  %vm967_vm14 = vweird.f32 %v3450_v7  ;;  %v850_v16 = vsel %vm2954_vm9, %v2834_v51, %v846_v43  ;;  %1433 = vmatmul.bf16.gmra.mxu1 %v1227_v55  ;;  %v3458_v36 = vld [vmem:[#allocation22_spill] sm:$0xff] }
 0x12e   :  { %vm2999_vm15 = vcmp.eq.f32.partialorder %v851_v1, 8.507059e+37  ;;  %v895_v56 = vsel %vm2969_vm10, %v2848_v39, %v891_v10  ;;  %vm3006_vm0 = vcmp.eq.f32.partialorder %v896_v14, 8.507059e+37  ;;  %vm982_vm1 = vweird.f32 %v2472_v62  ;;  %v3463_v14 = vld [vmem:[#allocation34_spill] sm:$0xff]  ;;  %vm3067_vm6 = vmor %vm967_vm14, %vm968_vm11 }
 0x12f   :  { %v994_v42 = vsub.f32 1.0, %v2896_v29  ;;  %1993 = vrcp.f32 %v2907_v60  ;;  %v869_v51 = vor.u32 1.1754944e-38, %v868_v46  ;;  %v885_v1 = vsel %vm2979_vm12, %v884_v3, %v880_v32  ;;  %v3455_v29 = vld [vmem:[#allocation19_spill] sm:$0xff] }
 0x130   :  { %v1009_v0 = vsub.f32 1.0, %v1008_v50  ;;  %1995 = vrcp.f32 %v2962_v31  ;;  %v865_v39 = vsel %vm2991_vm13, %v2866_v35, %v861_v47  ;;  %vm867_vm2 = vcmp.eq.f32.partialorder %v866_v8, 8.507059e+37  ;;  %v3464_v50 = vld [vmem:[#allocation23_spill] sm:$0xff] }
 0x131   :  { %1997 = vrcp.f32 %v2983_v12  ;;  %v855_v9 = vsel %vm2999_vm15, %v854_v5, %v850_v16  ;;  %v1740_v11 = vmul.f32 -1.442695, %v3455_v29  ;;  %v900_v37 = vsel %vm3006_vm0, %v899_v58, %v895_v56  ;;  %v3468_v5 = vld [vmem:[#allocation30_spill] sm:$0xff] }
 0x132   :  { %v1161_v27 = vmul.f32 %v2729_v30, %v3456_v22  ;;  %1999 = vrcp.f32 %v2985_v15  ;;  %v1156_v48 = vmul.f32 %v885_v1, %v3457_v53  ;;  %v1741_v35 = vmul.f32 -1.442695, %v3458_v36  ;;  %v3462_v30 = vld [vmem:[#allocation29_spill] sm:$0xff] }
 0x133   :  { %v966_v63 = vadd.f32 %v2545_v57, %v2747_v59  ;;  %vm983_vm3 = vweird.f32 %v2554_v28  ;;  %v870_v2 = vsel %vm867_vm2, %v869_v51, %v865_v39  ;;  %2001 = vpow2.f32 %v2904_v25  ;;  %v3472_v51 = vld [vmem:[#allocation28_spill] sm:$0xff] }
 0x134   :  { %v465_v33 = vpop.f32.mrf.mxu2  ;;  %v3459_v43 = vand.u32 2147483647, %v3450_v7  ;;  %v1154_v10 = vmul.f32 %v855_v9, %v3462_v30  ;;  %v1157_v55 = vmul.f32 %v900_v37, %v3463_v14  ;;  %v1742_v46 = vmul.f32 -1.442695, %v3464_v50  ;;  %vm3088_vm8 = vmor %vm982_vm1, %vm983_vm3  ;;  %v3481_v7 = vld [vmem:[#allocation14_spill] sm:$0xff] }
 0x135   :  { %v514_v18 = vpop.f32.mrf.mxu3  ;;  %v1188_v3 = vmul.f32 %v1156_v48, %v2924_v61  ;;  %v3044_v59 = vpop.eup %1993  ;;  %v981_v17 = vadd.f32 %v2554_v28, %v2756_v49  ;;  %v3465_v25 = vand.u32 2147483647, %v2472_v62  ;;  %v995_v8 = vmul.f32 %v2785_v34, %v994_v42 }
 0x136   :  { %vm3036_vm4 = vcmp.eq.f32.partialorder %v3459_v43, 8.507059e+37  ;;  %v1010_v32 = vmul.f32 %v2928_v41, %v1009_v0  ;;  %2003 = vpow2.f32 %v1740_v11  ;;  %v3056_v40 = vpop.eup %1995  ;;  %v1155_v61 = vmul.f32 %v870_v2, %v3468_v5 }
 0x137   :  { %vm3050_vm5 = vcmp.eq.f32.partialorder %v3465_v25, 8.507059e+37  ;;  %2005 = vpow2.f32 %v1741_v35  ;;  %v1186_v45 = vmul.f32 %v1154_v10, %v2887_v23  ;;  %v1189_v49 = vmul.f32 %v1157_v55, %v2926_v24  ;;  %v3061_v13 = vpop.eup %1997  ;;  %v3473_v23 = vld [vmem:[#allocation31_spill] sm:$0xff]  ;;  %v3476_v10 = vld [vmem:[#allocation32_spill] sm:$0xff] }
 0x138   :  { %v3072_v42 = vmul.f32 %v3471_v44, %v465_v33  ;;  %v3075_v1 = vmul.f32 %v3472_v51, %v514_v18  ;;  %v3082_v39 = vpop.eup %1999  ;;  %v989_v33 = vor.u32 1.1754944e-38, %v988_v38  ;;  %2007 = vpow2.f32 %v1742_v46 }
 0x139   :  { %v1187_v18 = vmul.f32 %v1155_v61, %v2889_v52  ;;  %v1228_v9 = vpack.c.bf16 %v1188_v3, %v1186_v45  ;;  %v2002_v11 = vpop.eup %2001  ;;  %v970_v37 = vsel %vm3067_vm6, %v2545_v57, %v966_v63  ;;  %v985_v22 = vsel %vm3088_vm8, %v2554_v28, %v981_v17 }
 0x13a   :  { %v996_v38 = vadd.f32 %v2785_v34, %v995_v8  ;;  %vm998_vm7 = vweird.f32 %v2785_v34  ;;  %v1001_v52 = vand.u32 2147483647, %v2702_v4  ;;  %v1003_v57 = vand.u32 2147483648, %v2702_v4 }
 0x13b   :  { %v1229_v53 = vpack.c.bf16 %v1189_v49, %v1187_v18  ;;  %v1011_v35 = vadd.f32 %v2928_v41, %v1010_v32  ;;  %vm1013_vm9 = vweird.f32 %v2928_v41  ;;  %v1016_v28 = vand.u32 2147483647, %v2836_v26  ;;  %1389 = vmatmul.bf16.gmra.mxu0 %v1228_v9  ;;  %v3482_v18 = vld [vmem:[#allocation15_spill] sm:$0xff]  ;;  %v3483_v9 = vld [vmem:[#allocation16_spill] sm:$0xff] }
 0x13c   :  { %v467_v58 = vpop.f32.mrf.mxu2  ;;  %v2004_v48 = vpop.eup %2003  ;;  %vm997_vm10 = vweird.f32 %v2702_v4  ;;  %v1018_v2 = vand.u32 2147483648, %v2836_v26  ;;  %v1023_v43 = vmul.f32 %v3044_v59, %v2907_v60  ;;  %v1038_v30 = vmul.f32 %v3056_v40, %v2962_v31 }
 0x13d   :  { %v516_v16 = vpop.f32.mrf.mxu3  ;;  %v3078_v24 = vmul.f32 %v3473_v23, %v467_v58  ;;  %v2006_v63 = vpop.eup %2005  ;;  %v975_v14 = vsel %vm3036_vm4, %v3476_v10, %v970_v37  ;;  %vm3123_vm11 = vmor %vm997_vm10, %vm998_vm7  ;;  %vm1012_vm12 = vweird.f32 %v2836_v26  ;;  %v1053_v4 = vmul.f32 %v3061_v13, %v2983_v12  ;;  %1438 = vmatmul.bf16.gmra.mxu1 %v1229_v53 }
 0x13e   :  { %v3080_v0 = vmul.f32 %v1161_v27, %v516_v16  ;;  %v1068_v46 = vmul.f32 %v3082_v39, %v2985_v15  ;;  %v2008_v3 = vpop.eup %2007  ;;  %v990_v17 = vsel %vm3050_vm5, %v989_v33, %v985_v22  ;;  %v1000_v19 = vsel %vm3123_vm11, %v2785_v34, %v996_v38  ;;  %vm3139_vm14 = vmor %vm1012_vm12, %vm1013_vm9  ;;  %v3484_v38 = vld [vmem:[#allocation17_spill] sm:$0xff] }
 0x13f   :  { %v1230_v27 = vpack.c.bf16 %v3078_v24, %v3072_v42  ;;  %vm1002_vm13 = vcmp.eq.f32.partialorder %v1001_v52, 8.507059e+37  ;;  %v3143_v26 = vadd.f32 1.0, %v2002_v11  ;;  %v1004_v5 = vor.u32 1.1754944e-38, %v1003_v57 }
 0x140   :  { %v1231_v62 = vpack.c.bf16 %v3080_v0, %v3075_v1  ;;  %v1015_v47 = vsel %vm3139_vm14, %v2928_v41, %v1011_v35  ;;  %vm1017_vm15 = vcmp.eq.f32.partialorder %v1016_v28, 8.507059e+37  ;;  %v3148_v61 = vadd.f32 1.0, %v2004_v48  ;;  %v3493_v1 = vld [vmem:[#allocation18_spill] sm:$0xff] }
 0x141   :  { %v1019_v34 = vor.u32 1.1754944e-38, %v1018_v2  ;;  %v1024_v45 = vsub.f32 1.0, %v1023_v43  ;;  %v1039_v49 = vsub.f32 1.0, %v1038_v30  ;;  %v3150_v58 = vadd.f32 1.0, %v2006_v63 }
 0x142   :  { %v1005_v16 = vsel %vm1002_vm13, %v1004_v5, %v1000_v19  ;;  %v1054_v56 = vsub.f32 1.0, %v1053_v4  ;;  %v1069_v44 = vsub.f32 1.0, %v1068_v46  ;;  %v3152_v51 = vadd.f32 1.0, %v2008_v3 }
 0x143   :  { %v1020_v23 = vsel %vm1017_vm15, %v1019_v34, %v1015_v47  ;;  %2009 = vrcp.f32 %v3143_v26  ;;  %v1162_v33 = vmul.f32 %v975_v14, %v3481_v7  ;;  %v1163_v41 = vmul.f32 %v990_v17, %v3482_v18 }
 0x144   :  { %v470_v8 = vpop.f32.mrf.mxu2  ;;  %2011 = vrcp.f32 %v3148_v61  ;;  %v1164_v11 = vmul.f32 %v1005_v16, %v3483_v9  ;;  %v1025_v37 = vmul.f32 %v3044_v59, %v1024_v45  ;;  %v1040_v22 = vmul.f32 %v3056_v40, %v1039_v49 }
 0x145   :  { %v519_v32 = vpop.f32.mrf.mxu3  ;;  %2013 = vrcp.f32 %v3150_v58  ;;  %v1165_v52 = vmul.f32 %v1020_v23, %v3484_v38  ;;  %v1055_v53 = vmul.f32 %v3061_v13, %v1054_v56  ;;  %v1070_v48 = vmul.f32 %v3082_v39, %v1069_v44 }
 0x146   :  { %2015 = vrcp.f32 %v3152_v51  ;;  %vm1027_vm0 = vweird.f32 %v2907_v60  ;;  %vm1028_vm1 = vweird.f32 %v3044_v59  ;;  %vm1042_vm2 = vweird.f32 %v2962_v31 }
 0x147   :  { %vm1043_vm3 = vweird.f32 %v3056_v40  ;;  %v3170_v28 = vmul.f32 %v1162_v33, %v470_v8  ;;  %v3172_v63 = vmul.f32 %v1163_v41, %v519_v32  ;;  %v1026_v10 = vadd.f32 %v3044_v59, %v1025_v37  ;;  %vm3190_vm6 = vmor %vm1027_vm0, %vm1028_vm1 }
 0x148   :  { %v1041_v14 = vadd.f32 %v3056_v40, %v1040_v22  ;;  %vm1058_vm4 = vweird.f32 %v3061_v13  ;;  %vm1073_vm5 = vweird.f32 %v3082_v39  ;;  %v1056_v46 = vadd.f32 %v3061_v13, %v1055_v53  ;;  %vm3208_vm8 = vmor %vm1042_vm2, %vm1043_vm3 }
 0x149   :  { %v3178_v30 = vpop.eup %2009  ;;  %v1071_v3 = vadd.f32 %v3082_v39, %v1070_v48  ;;  %v1031_v8 = vand.u32 2147483647, %v2907_v60  ;;  %v1033_v32 = vand.u32 2147483648, %v2907_v60  ;;  %vm1057_vm7 = vweird.f32 %v2983_v12 }
 0x14a   :  { %v3184_v55 = vpop.eup %2011  ;;  %v1048_v34 = vand.u32 2147483648, %v2962_v31  ;;  %vm3218_vm9 = vmor %vm1057_vm7, %vm1058_vm4  ;;  %v1063_v60 = vand.u32 2147483648, %v2983_v12  ;;  %vm1072_vm10 = vweird.f32 %v2985_v15  ;;  %v1078_v49 = vand.u32 2147483648, %v2985_v15 }
 0x14b   :  { %v3200_v25 = vpop.eup %2013  ;;  %v1046_v16 = vand.u32 2147483647, %v2962_v31  ;;  %v1061_v56 = vand.u32 2147483647, %v2983_v12  ;;  %vm3229_vm11 = vmor %vm1072_vm10, %vm1073_vm5  ;;  %v1076_v23 = vand.u32 2147483647, %v2985_v15  ;;  %1394 = vmatmul.bf16.gmra.mxu0 %v1230_v27  ;;  %v1030_v7 = vsel %vm3190_vm6, %v3044_v59, %v1026_v10 }
 0x14c   :  { %v472_v57 = vpop.f32.mrf.mxu2  ;;  %v3213_v47 = vpop.eup %2015  ;;  %v1045_v31 = vsel %vm3208_vm8, %v3056_v40, %v1041_v14  ;;  %v1060_v12 = vsel %vm3218_vm9, %v3061_v13, %v1056_v46  ;;  %v1075_v15 = vsel %vm3229_vm11, %v3082_v39, %v1071_v3  ;;  %v1083_v42 = vmul.f32 %v3178_v30, %v3143_v26 }
 0x14d   :  { %v521_v35 = vpop.f32.mrf.mxu3  ;;  %v3174_v2 = vmul.f32 %v1164_v11, %v472_v57  ;;  %v1098_v24 = vmul.f32 %v3184_v55, %v3148_v61  ;;  %v1113_v59 = vmul.f32 %v3200_v25, %v3150_v58  ;;  %v1128_v40 = vmul.f32 %v3213_v47, %v3152_v51  ;;  %1443 = vmatmul.bf16.gmra.mxu1 %v1231_v62 }
 0x14e   :  { %v3176_v43 = vmul.f32 %v1165_v52, %v521_v35  ;;  %v1034_v33 = vor.u32 1.1754944e-38, %v1033_v32  ;;  %v1049_v39 = vor.u32 1.1754944e-38, %v1048_v34  ;;  %v1064_v18 = vor.u32 1.1754944e-38, %v1063_v60 }
 0x14f   :  { %v1232_v17 = vpack.c.bf16 %v3174_v2, %v3170_v28  ;;  %v1079_v41 = vor.u32 1.1754944e-38, %v1078_v49  ;;  %vm1032_vm12 = vcmp.eq.f32.partialorder %v1031_v8, 8.507059e+37  ;;  %vm1047_vm13 = vcmp.eq.f32.partialorder %v1046_v16, 8.507059e+37 }
 0x150   :  { %v1233_v19 = vpack.c.bf16 %v3176_v43, %v3172_v63  ;;  %vm1062_vm14 = vcmp.eq.f32.partialorder %v1061_v56, 8.507059e+37  ;;  %vm1077_vm15 = vcmp.eq.f32.partialorder %v1076_v23, 8.507059e+37  ;;  %v1035_v9 = vsel %vm1032_vm12, %v1034_v33, %v1030_v7 }
 0x151   :  { %v1050_v11 = vsel %vm1047_vm13, %v1049_v39, %v1045_v31  ;;  %v1065_v37 = vsel %vm1062_vm14, %v1064_v18, %v1060_v12  ;;  %v1080_v22 = vsel %vm1077_vm15, %v1079_v41, %v1075_v15  ;;  %v1084_v38 = vsub.f32 1.0, %v1083_v42 }
 0x152   :  { %v1099_v52 = vsub.f32 1.0, %v1098_v24  ;;  %v1114_v53 = vsub.f32 1.0, %v1113_v59  ;;  %v1129_v48 = vsub.f32 1.0, %v1128_v40  ;;  %v1166_v0 = vmul.f32 %v1035_v9, %v3493_v1 }
 0x153   :  { %v1167_v62 = vmul.f32 %v1050_v11, %v2204_v6  ;;  %v1168_v57 = vmul.f32 %v1065_v37, %v2226_v20  ;;  %v1169_v35 = vmul.f32 %v1080_v22, %v2228_v21  ;;  %v1085_v10 = vmul.f32 %v3178_v30, %v1084_v38 }
 0x154   :  { %v475_v13 = vpop.f32.mrf.mxu2  ;;  %v1100_v14 = vmul.f32 %v3184_v55, %v1099_v52  ;;  %v1115_v4 = vmul.f32 %v3200_v25, %v1114_v53  ;;  %v1130_v46 = vmul.f32 %v3213_v47, %v1129_v48  ;;  %vm1087_vm0 = vweird.f32 %v3143_v26 }
 0x155   :  { %v524_v27 = vpop.f32.mrf.mxu3  ;;  %v1198_v32 = vmul.f32 %v1166_v0, %v475_v13  ;;  %vm1088_vm1 = vweird.f32 %v3178_v30  ;;  %v1091_v6 = vand.u32 2147483647, %v3143_v26  ;;  %vm1103_vm2 = vweird.f32 %v3184_v55 }
 0x156   :  { %v1199_v5 = vmul.f32 %v1167_v62, %v524_v27  ;;  %v1086_v60 = vadd.f32 %v3178_v30, %v1085_v10  ;;  %v1093_v49 = vand.u32 2147483648, %v3143_v26  ;;  %vm1102_vm3 = vweird.f32 %v3148_v61  ;;  %vm3276_vm5 = vmor %vm1087_vm0, %vm1088_vm1 }
 0x157   :  { %vm1118_vm4 = vweird.f32 %v3200_v25  ;;  %v1101_v56 = vadd.f32 %v3184_v55, %v1100_v14  ;;  %v1116_v44 = vadd.f32 %v3200_v25, %v1115_v4  ;;  %v1131_v23 = vadd.f32 %v3213_v47, %v1130_v46  ;;  %vm3284_vm8 = vmor %vm1102_vm3, %vm1103_vm2 }
 0x158   :  { %vm1133_vm6 = vweird.f32 %v3213_v47  ;;  %v1108_v26 = vand.u32 2147483648, %v3148_v61  ;;  %vm1117_vm7 = vweird.f32 %v3150_v58  ;;  %v1123_v31 = vand.u32 2147483648, %v3150_v58 }
 0x159   :  { %v1138_v12 = vand.u32 2147483648, %v3152_v51  ;;  %v1106_v15 = vand.u32 2147483647, %v3148_v61  ;;  %vm3296_vm9 = vmor %vm1117_vm7, %vm1118_vm4  ;;  %v1121_v24 = vand.u32 2147483647, %v3150_v58  ;;  %vm1132_vm10 = vweird.f32 %v3152_v51 }
 0x15a   :  { %v1136_v59 = vand.u32 2147483647, %v3152_v51  ;;  %vm3303_vm11 = vmor %vm1132_vm10, %vm1133_vm6  ;;  %v1090_v2 = vsel %vm3276_vm5, %v3178_v30, %v1086_v60  ;;  %v1105_v58 = vsel %vm3284_vm8, %v3184_v55, %v1101_v56  ;;  %v1120_v51 = vsel %vm3296_vm9, %v3200_v25, %v1116_v44 }
 0x15b   :  { %1399 = vmatmul.bf16.gmra.mxu0 %v1232_v17  ;;  %v1135_v17 = vsel %vm3303_vm11, %v3213_v47, %v1131_v23  ;;  %v1094_v63 = vor.u32 1.1754944e-38, %v1093_v49  ;;  %v1109_v43 = vor.u32 1.1754944e-38, %v1108_v26  ;;  %v1139_v13 = vor.u32 1.1754944e-38, %v1138_v12 }
 0x15c   :  { %v477_v3 = vpop.f32.mrf.mxu2  ;;  %vm1092_vm12 = vcmp.eq.f32.partialorder %v1091_v6, 8.507059e+37  ;;  %vm1107_vm13 = vcmp.eq.f32.partialorder %v1106_v15, 8.507059e+37  ;;  %vm1122_vm14 = vcmp.eq.f32.partialorder %v1121_v24, 8.507059e+37  ;;  %vm1137_vm15 = vcmp.eq.f32.partialorder %v1136_v59, 8.507059e+37 }
 0x15d   :  { %v526_v8 = vpop.f32.mrf.mxu3  ;;  %v1200_v34 = vmul.f32 %v1168_v57, %v477_v3  ;;  %1448 = vmatmul.bf16.gmra.mxu1 %v1233_v19  ;;  %v1124_v19 = vor.u32 1.1754944e-38, %v1123_v31  ;;  %v1095_v30 = vsel %vm1092_vm12, %v1094_v63, %v1090_v2  ;;  %v1110_v27 = vsel %vm1107_vm13, %v1109_v43, %v1105_v58 }
 0x15e   :  { %v1201_v45 = vmul.f32 %v1169_v35, %v526_v8  ;;  %v1140_v55 = vsel %vm1137_vm15, %v1139_v13, %v1135_v17  ;;  %v1170_v39 = vmul.f32 %v1095_v30, %v2267_v54  ;;  %v1171_v25 = vmul.f32 %v1110_v27, %v3455_v29 }
 0x15f   :  { %v1234_v20 = vpack.c.bf16 %v1200_v34, %v1198_v32  ;;  %v1125_v33 = vsel %vm1122_vm14, %v1124_v19, %v1120_v51  ;;  %v1173_v47 = vmul.f32 %v1140_v55, %v3464_v50 }
 0x160   :  { %v1235_v21 = vpack.c.bf16 %v1201_v45, %v1199_v5  ;;  %v1172_v18 = vmul.f32 %v1125_v33, %v3458_v36 }
 0x164   :  { %v480_v28 = vpop.f32.mrf.mxu2 }
 0x165   :  { %v529_v61 = vpop.f32.mrf.mxu3  ;;  %v1202_v11 = vmul.f32 %v1170_v39, %v480_v28 }
 0x166   :  { %v1203_v37 = vmul.f32 %v1171_v25, %v529_v61 }
 0x16b   :  { %1404 = vmatmul.bf16.gmra.mxu0 %v1234_v20 }
 0x16c   :  { %v482_v41 = vpop.f32.mrf.mxu2 }
 0x16d   :  { %v531_v9 = vpop.f32.mrf.mxu3  ;;  %v1204_v22 = vmul.f32 %v1172_v18, %v482_v41  ;;  %1453 = vmatmul.bf16.gmra.mxu1 %v1235_v21 }
 0x16e   :  { %v1205_v38 = vmul.f32 %v1173_v47, %v531_v9 }
 0x16f   :  { %v1236_v52 = vpack.c.bf16 %v1204_v22, %v1202_v11 }
 0x170   :  { %v1237_v53 = vpack.c.bf16 %v1205_v38, %v1203_v37 }
 0x17b   :  { %1409 = vmatmul.bf16.gmra.mxu0 %v1236_v52 }
 0x17d   :  { %1458 = vmatmul.bf16.gmra.mxu1 %v1237_v53 }
 0x188   :  { %v1375_v48 = vpop.f32.mrf.mxu0 }
 0x18a   :  { %v1424_v54 = vpop.f32.mrf.mxu1 }
 0x18b   :  { %v1425_v1 = vadd.f32 %v1424_v54, %v1375_v48 }
 0x18d   :  { %1515 = vst [vmem:[#allocation9] sm:$0xff] %v1425_v1 }
 0x190   :  { %v1377_v29 = vpop.f32.mrf.mxu0 }
 0x192   :  { %v1426_v36 = vpop.f32.mrf.mxu1 }
 0x193   :  { %v1427_v0 = vadd.f32 %v1426_v36, %v1377_v29 }
 0x195   :  { %1516 = vst [vmem:[#allocation9 + $0x8] sm:$0xff] %v1427_v0 }
 0x198   :  { %v1380_v50 = vpop.f32.mrf.mxu0 }
 0x19a   :  { %v1429_v62 = vpop.f32.mrf.mxu1 }
 0x19b   :  { %v1430_v57 = vadd.f32 %v1429_v62, %v1380_v50 }
 0x19d   :  { %1517 = vst [vmem:[#allocation9 + $0x10] sm:$0xff] %v1430_v57 }
 0x1a0   :  { %v1382_v35 = vpop.f32.mrf.mxu0 }
 0x1a2   :  { %v1431_v10 = vpop.f32.mrf.mxu1 }
 0x1a3   :  { %v1432_v14 = vadd.f32 %v1431_v10, %v1382_v35 }
 0x1a5   :  { %1518 = vst [vmem:[#allocation9 + $0x18] sm:$0xff] %v1432_v14 }
 0x1a8   :  { %v1385_v4 = vpop.f32.mrf.mxu0 }
 0x1aa   :  { %v1434_v46 = vpop.f32.mrf.mxu1 }
 0x1ab   :  { %v1435_v3 = vadd.f32 %v1434_v46, %v1385_v4 }
 0x1ad   :  { %1519 = vst [vmem:[#allocation9 + $0x20] sm:$0xff] %v1435_v3 }
 0x1b0   :  { %v1387_v8 = vpop.f32.mrf.mxu0 }
 0x1b2   :  { %v1436_v32 = vpop.f32.mrf.mxu1 }
 0x1b3   :  { %v1437_v5 = vadd.f32 %v1436_v32, %v1387_v8 }
 0x1b5   :  { %1520 = vst [vmem:[#allocation9 + $0x28] sm:$0xff] %v1437_v5 }
 0x1b8   :  { %v1390_v34 = vpop.f32.mrf.mxu0 }
 0x1ba   :  { %v1439_v45 = vpop.f32.mrf.mxu1 }
 0x1bb   :  { %v1440_v6 = vadd.f32 %v1439_v45, %v1390_v34 }
 0x1bd   :  { %1521 = vst [vmem:[#allocation9 + $0x30] sm:$0xff] %v1440_v6 }
 0x1c0   :  { %v1392_v20 = vpop.f32.mrf.mxu0 }
 0x1c2   :  { %v1441_v21 = vpop.f32.mrf.mxu1 }
 0x1c3   :  { %v1442_v60 = vadd.f32 %v1441_v21, %v1392_v20 }
 0x1c5   :  { %1522 = vst [vmem:[#allocation9 + $0x38] sm:$0xff] %v1442_v60 }
 0x1c8   :  { %v1395_v49 = vpop.f32.mrf.mxu0 }
 0x1ca   :  { %v1444_v16 = vpop.f32.mrf.mxu1 }
 0x1cb   :  { %v1445_v56 = vadd.f32 %v1444_v16, %v1395_v49 }
 0x1cd   :  { %1523 = vst [vmem:[#allocation9 + $0x40] sm:$0xff] %v1445_v56 }
 0x1d0   :  { %v1397_v44 = vpop.f32.mrf.mxu0 }
 0x1d2   :  { %v1446_v23 = vpop.f32.mrf.mxu1 }
 0x1d3   :  { %v1447_v7 = vadd.f32 %v1446_v23, %v1397_v44 }
 0x1d5   :  { %1524 = vst [vmem:[#allocation9 + $0x48] sm:$0xff] %v1447_v7 }
 0x1d8   :  { %v1400_v26 = vpop.f32.mrf.mxu0 }
 0x1da   :  { %v1449_v31 = vpop.f32.mrf.mxu1 }
 0x1db   :  { %v1450_v12 = vadd.f32 %v1449_v31, %v1400_v26 }
 0x1dd   :  { %1525 = vst [vmem:[#allocation9 + $0x50] sm:$0xff] %v1450_v12 }
 0x1e0   :  { %v1402_v15 = vpop.f32.mrf.mxu0 }
 0x1e2   :  { %v1451_v42 = vpop.f32.mrf.mxu1 }
 0x1e3   :  { %v1452_v24 = vadd.f32 %v1451_v42, %v1402_v15 }
 0x1e5   :  { %1526 = vst [vmem:[#allocation9 + $0x58] sm:$0xff] %v1452_v24 }
 0x1e8   :  { %v1405_v59 = vpop.f32.mrf.mxu0 }
 0x1ea   :  { %v1454_v40 = vpop.f32.mrf.mxu1 }
 0x1eb   :  { %v1455_v28 = vadd.f32 %v1454_v40, %v1405_v59 }
 0x1ed   :  { %1527 = vst [vmem:[#allocation9 + $0x60] sm:$0xff] %v1455_v28 }
 0x1f0   :  { %v1407_v61 = vpop.f32.mrf.mxu0 }
 0x1f2   :  { %v1456_v2 = vpop.f32.mrf.mxu1 }
 0x1f3   :  { %v1457_v58 = vadd.f32 %v1456_v2, %v1407_v61 }
 0x1f5   :  { %1528 = vst [vmem:[#allocation9 + $0x68] sm:$0xff] %v1457_v58 }
 0x1f8   :  { %v1410_v51 = vpop.f32.mrf.mxu0 }
 0x1fa   :  { %v1459_v17 = vpop.f32.mrf.mxu1 }
 0x1fb   :  { %v1460_v63 = vadd.f32 %v1459_v17, %v1410_v51 }
 0x1fd   :  { %1529 = vst [vmem:[#allocation9 + $0x70] sm:$0xff] %v1460_v63 }
 0x200   :  { %v1412_v43 = vpop.f32.mrf.mxu0 }
 0x202   :  { %v1461_v19 = vpop.f32.mrf.mxu1 }
 0x203   :  { %v1462_v13 = vadd.f32 %v1461_v19, %v1412_v43 }
 0x205   :  { %1530 = vst [vmem:[#allocation9 + $0x78] sm:$0xff] %v1462_v13 }
 0x206   :  { %1543 = dma.vmem_to_hbm [thread:$0]  %s1536_s2, 2048, %s1538_s5, [#allocation5], %s2127_s6, %s2127_s6, %s2128_s7  }
 0x207   :  { %2117 = dma.done.wait [#allocation5], 2048  }
 0x208   :  { %2118 = vsyncadd [#allocation5], 4294965248 }
 0x209   :  { %1548 = vsyncpa [#allocation4], 1 }
 0x20a   :  { %1549 = vsyncpa [#allocation7], 1 }
 0x20b   :  { %1550 = vsyncpa [#allocation5], 1 }

</bundles_post_ra>
